<compile_context>
chip_gen: v6e
topology: v6e:2x2x1
jax: 0.10.0
libtpu: 0.0.40
codegen_flags: <defaults>
</compile_context>

<pallas_src>
import functools

import jax
import jax.numpy as jnp
from jax.experimental import pallas as pl
from jax.experimental.pallas import tpu as pltpu


# ----------------------------------------------------------------------------
# Fused kernel: one (batch, row-tile) step.
#   slabs_ref : (4, ho_t+1, Ws, C) bf16  parity slabs of the padded input tile
#               (rows carry a +1 halo; Ws = Wo+1 carries the column halo)
#   gates_ref : (1, 2, C) f32   row 0: channel-SE gate, row 1: spatial-SE weight
#   w9_ref    : (9*C, Cout) bf16  folded 3x3 conv taps (BN scale pre-folded)
#   wds_ref   : (C, Cout)  bf16  folded 1x1 downsample conv
#   shifts_ref: (3, Cout)  f32   [bconv*scale, bn_shift+ds_shift, sSE bias]
#   o_ref     : (1, ho_t*Wo, Cout) f32
#   lhs_ref   : (ho_t*Wo, 9*C) f32 scratch -- the gated im2col LHS
# ----------------------------------------------------------------------------
def fused_kernel(slabs_ref, gates_ref, w9_ref, wds_ref, shifts_ref, o_ref,
                 lhs_ref, *, ho_t, wo, cin, cout):
    neg = 0.01
    m = ho_t * wo
    c_gate = gates_ref[0, 0:1, :].reshape(1, 1, cin)             # (1,1,C) f32
    ws_row = gates_ref[0, 1:2, :].reshape(1, 1, cin)             # (1,1,C) f32
    bs = shifts_ref[2:3, 0:1]                                    # (1,1)

    # Load the four parity slabs once (bf16 values).
    slabs = [slabs_ref[s] for s in range(4)]

    # Spatial-SE gate field per parity slab (f32, no channel axis -> cheap to
    # keep live).  Gating commutes with zero padding: gated zeros stay zero.
    sgate = [jax.nn.sigmoid(jnp.sum(slabs[s] * ws_row, axis=-1, keepdims=True)
                            + bs) for s in range(4)]

    # Build the gated im2col LHS: tap k=(kh,kw) is a contiguous window of one
    # parity slab; the scSE gate (cSE + sSE) is applied while copying into the
    # scratch, so no fully-gated slab copies stay live.
    for kh in range(3):
        for kw in range(3):
            k, s = kh * 3 + kw, 2 * (kh % 2) + (kw % 2)
            r0, c0 = kh // 2, kw // 2
            win = slabs[s][r0:r0 + ho_t, c0:c0 + wo, :]          # (ho_t,wo,C) bf16
            g = c_gate + sgate[s][r0:r0 + ho_t, c0:c0 + wo, :]   # (ho_t,wo,C) f32
            lhs_ref[:, k * cin:(k + 1) * cin] = (win * g).reshape(m, cin)

    # ONE deep MXU contraction over K = 9*Cin (bf16 operands, f32 accumulate),
    # then scaled conv bias + LeakyReLU (Dropout is identity in eval mode).
    y = jnp.dot(lhs_ref[...].astype(jnp.bfloat16), w9_ref[...],
                preferred_element_type=jnp.float32)
    y = y + shifts_ref[0:1, :]
    y = jnp.where(y > 0, y, neg * y)

    # Residual: 1x1 stride-2 conv of the *ungated* input == (1,1)-parity slab.
    # Kept as a separate matmul: LeakyReLU sits between the main-path BN output
    # and this add, so it cannot be folded into the contraction above.
    ident = slabs[3][0:ho_t, 0:wo, :].reshape(m, cin)            # bf16
    y = y + jnp.dot(ident, wds_ref[...], preferred_element_type=jnp.float32)
    y = y + shifts_ref[1:2, :]

    o_ref[0] = jnp.where(y > 0, y, neg * y)                      # final LeakyReLU


# ----------------------------------------------------------------------------
# Parameter folding (host-side, once per model)
# ----------------------------------------------------------------------------
def _fold_bn(gamma, beta, mean, var, eps=1e-5):
    scale = gamma / jnp.sqrt(var + eps)
    shift = beta - mean * scale
    return scale, shift


def fold_params(params, eps=1e-5):
    scale, bn_shift = _fold_bn(params["bn_gamma"], params["bn_beta"],
                               params["bn_mean"], params["bn_var"], eps)
    ds_scale, ds_shift = _fold_bn(params["ds_gamma"], params["ds_beta"],
                                  params["ds_mean"], params["ds_var"], eps)
    if float(jnp.min(scale)) <= 0.0:
        # Folding the BN scale through LeakyReLU is exact only for scale > 0.
        # TODO(synk): add an unfolded fallback path for such checkpoints.
        raise ValueError("BN gamma/sqrt(var+eps) must be > 0 to fold through LeakyReLU")
    cin, cout = params["wconv"].shape[2], params["wconv"].shape[3]
    w9 = (params["wconv"] * scale).reshape(9 * cin, cout).astype(jnp.bfloat16)
    wds = (params["wds"] * ds_scale).astype(jnp.bfloat16)
    shifts = jnp.stack([
        params["bconv"] * scale,                         # pre-LeakyReLU (scaled conv bias)
        bn_shift + ds_shift,                             # post-add shift
        jnp.broadcast_to(params["bs"][0, 0], (cout,)),   # spatial-SE bias (scalar bcast)
    ]).astype(jnp.float32)
    return {"w9": w9, "wds": wds, "shifts": shifts,
            "w1": params["w1"], "b1": params["b1"],
            "w2": params["w2"], "b2": params["b2"], "ws": params["ws"]}


# ----------------------------------------------------------------------------
# Row-tile selection (generation-safe VMEM budget) and VMEM estimate
# ----------------------------------------------------------------------------
def _tile_vmem_bytes(ho_t, wo, ws, cin, cout):
    slab = 4 * (ho_t + 1) * ws * cin * 2           # bf16 input block
    outb = ho_t * wo * cout * 4                    # f32 output block
    lhs = ho_t * wo * 9 * cin * 4                  # f32 im2col scratch
    wts = 10 * cin * cout * 2                      # bf16 folded weights
    gate = (ho_t + 1) * ws * 4 * 4 + ho_t * wo * cin * 4   # sSE fields + gated window
    return 2 * (slab + outb) + lhs + 2 * wts + gate        # x2 = double buffering


def _choose_row_tile(ho, wo, ws, cin, cout, budget_bytes=24 << 20):
    # Largest divisor of Ho whose (double-buffered) tile fits a conservative
    # generation-safe VMEM budget and keeps the flattened output tile
    # sublane-aligned.  TODO(synk): re-derive the budget per generation
    # (v7x has only 64 MiB physical VMEM vs 128 MiB on v5e/v6e).
    last = ho
    for ho_t in range(ho, 0, -1):
        if ho % ho_t:
            continue
        if ho_t != ho and (ho_t * wo) % 8:
            continue
        last = ho_t
        if _tile_vmem_bytes(ho_t, wo, ws, cin, cout) <= budget_bytes:
            return ho_t
    return last


# ----------------------------------------------------------------------------
# Wrapper
# ----------------------------------------------------------------------------
@functools.partial(jax.jit, static_argnames=("in_ch", "out_ch", "row_tile"))
def pscse_with_cab(x_nchw, folded, *, in_ch, out_ch, row_tile=None):
    N, C, H, W = x_nchw.shape
    assert C == in_ch
    assert H % 2 == 0 and W % 2 == 0   # TODO(synk): odd spatial sizes not handled
    Ho, Wo = H // 2, W // 2
    Hs, Ws = Ho + 1, Wo + 1

    ho_t = row_tile if row_tile is not None else _choose_row_tile(Ho, Wo, Ws, C, out_ch)
    assert Ho % ho_t == 0              # TODO(synk): ragged row tiles not handled
    n_t = Ho // ho_t
    m_tile = ho_t * Wo

    x_nhwc = jnp.transpose(x_nchw, (0, 2, 3, 1)).astype(jnp.float32)     # (N,H,W,C)

    # Channel-SE gate (global pool + tiny MLP) stays in the f32 wrapper.
    hi = jax.lax.Precision.HIGHEST
    pooled = jnp.mean(x_nhwc, axis=(1, 2))                               # (N,C)
    z = jnp.maximum(jnp.dot(pooled, folded["w1"], precision=hi) + folded["b1"], 0.0)
    c_gate = jax.nn.sigmoid(jnp.dot(z, folded["w2"], precision=hi) + folded["b2"])
    ws_row = jnp.broadcast_to(folded["ws"].reshape(1, 1, C), (N, 1, C))
    gates = jnp.concatenate([c_gate[:, None, :], ws_row], axis=1).astype(jnp.float32)

    # Parity decomposition of the zero-padded image + per-row-tile blocks with a
    # duplicated +1 halo row, shipped to the kernel in bf16.
    # TODO(synk): fold these relayout passes into the kernel (strided DMA from
    #             pl.ANY) / keep NHWC end-to-end to cut wrapper HBM traffic.
    xp = jnp.pad(x_nhwc, ((0, 0), (1, 1), (1, 1), (0, 0)))               # (N,H+2,W+2,C)
    slabs = jnp.stack([xp[:, a::2, b::2, :] for a in (0, 1) for b in (0, 1)],
                      axis=1)                                            # (N,4,Hs,Ws,C)
    tiles = jnp.stack([slabs[:, :, t * ho_t:t * ho_t + ho_t + 1, :, :]
                       for t in range(n_t)], axis=1)                     # (N,n_t,4,ho_t+1,Ws,C)
    tiles = tiles.reshape(N * n_t * 4, ho_t + 1, Ws, C).astype(jnp.bfloat16)

    vmem_limit = int(min(64 << 20,
                         max(32 << 20, 4 * _tile_vmem_bytes(ho_t, Wo, Ws, C, out_ch))))

    kernel = functools.partial(fused_kernel, ho_t=ho_t, wo=Wo, cin=C, cout=out_ch)
    y = pl.pallas_call(
        kernel,
        out_shape=jax.ShapeDtypeStruct((N, Ho * Wo, out_ch), jnp.float32),
        grid=(N, n_t),
        in_specs=[
            pl.BlockSpec((4, ho_t + 1, Ws, C), lambda n, t: (n * n_t + t, 0, 0, 0)),
            pl.BlockSpec((1, 2, C), lambda n, t: (n, 0, 0)),
            pl.BlockSpec((9 * C, out_ch), lambda n, t: (0, 0)),
            pl.BlockSpec((C, out_ch), lambda n, t: (0, 0)),
            pl.BlockSpec((3, out_ch), lambda n, t: (0, 0)),
        ],
        out_specs=pl.BlockSpec((1, m_tile, out_ch), lambda n, t: (n, t, 0)),
        scratch_shapes=[pltpu.VMEM((m_tile, 9 * C), jnp.float32)],
        compiler_params=pltpu.CompilerParams(
            dimension_semantics=("parallel", "parallel"),
            vmem_limit_bytes=vmem_limit),
    )(tiles, gates, folded["w9"], folded["wds"], folded["shifts"])

    # Back to NCHW to match the PyTorch module.
    # TODO(synk): emit the consumer's layout directly to skip this transpose.
    return jnp.transpose(y.reshape(N, Ho, Wo, out_ch), (0, 3, 1, 2))


# ----------------------------------------------------------------------------
# Parameters + pure-JAX reference (eval-mode semantics of the PyTorch module)
# ----------------------------------------------------------------------------
def init_params(key, in_ch, out_ch, reduction):
    cr = max(1, in_ch // reduction)
    ks = jax.random.split(key, 8)
    p = {}
    # channel-SE FCs (PyTorch 1x1 convs -> plain FCs here)
    p["w1"] = jax.random.normal(ks[0], (in_ch, cr), jnp.float32) * 0.3
    p["b1"] = jnp.zeros((1, cr), jnp.float32)
    p["w2"] = jax.random.normal(ks[1], (cr, in_ch), jnp.float32) * 0.3
    p["b2"] = jnp.zeros((1, in_ch), jnp.float32)
    # spatial-SE 1x1 conv
    p["ws"] = jax.random.normal(ks[2], (in_ch, 1), jnp.float32) * 0.3
    p["bs"] = jnp.zeros((1, 1), jnp.float32)
    # main 3x3 stride-2 conv, stored as (3,3,Cin,Cout)
    p["wconv"] = jax.random.normal(ks[3], (3, 3, in_ch, out_ch), jnp.float32) * 0.1
    p["bconv"] = jax.random.normal(ks[4], (out_ch,), jnp.float32) * 0.05
    # main-path BatchNorm (eval stats; gamma > 0 so the LeakyReLU fold is exact)
    p["bn_gamma"] = 1.0 + 0.05 * jnp.arange(out_ch, dtype=jnp.float32)
    p["bn_beta"] = 0.02 * jnp.arange(out_ch, dtype=jnp.float32)
    p["bn_mean"] = 0.01 * jnp.arange(out_ch, dtype=jnp.float32)
    p["bn_var"] = 1.0 + 0.1 * jnp.arange(out_ch, dtype=jnp.float32)
    # downsample 1x1 stride-2 conv (no bias) + its BatchNorm
    p["wds"] = jax.random.normal(ks[5], (in_ch, out_ch), jnp.float32) * 0.1
    p["ds_gamma"] = 1.0 - 0.02 * jnp.arange(out_ch, dtype=jnp.float32)
    p["ds_beta"] = -0.01 * jnp.arange(out_ch, dtype=jnp.float32)
    p["ds_mean"] = 0.005 * jnp.arange(out_ch, dtype=jnp.float32)
    p["ds_var"] = 1.0 + 0.05 * jnp.arange(out_ch, dtype=jnp.float32)
    return p


def reference_forward(x_nchw, params, eps=1e-5):
    hi = jax.lax.Precision.HIGHEST
    x = x_nchw.astype(jnp.float32)
    # scSE: channel gate + spatial gate, combined additively.
    pooled = jnp.mean(x, axis=(2, 3))
    z = jnp.maximum(jnp.dot(pooled, params["w1"], precision=hi) + params["b1"], 0.0)
    cg = jax.nn.sigmoid(jnp.dot(z, params["w2"], precision=hi) + params["b2"])
    slog = jnp.einsum("nchw,c->nhw", x, params["ws"][:, 0], precision=hi) + params["bs"][0, 0]
    sg = jax.nn.sigmoid(slog)[:, None, :, :]
    gated = x * cg[:, :, None, None] + x * sg
    # conv 3x3 / stride 2 / pad 1 (+bias) -> LeakyReLU -> Dropout(eval) -> BN(eval)
    out = jax.lax.conv_general_dilated(
        gated, params["wconv"], window_strides=(2, 2), padding=((1, 1), (1, 1)),
        dimension_numbers=("NCHW", "HWIO", "NCHW"), precision=hi)
    out = out + params["bconv"][None, :, None, None]
    out = jnp.where(out > 0, out, 0.01 * out)
    scale = params["bn_gamma"] / jnp.sqrt(params["bn_var"] + eps)
    shift = params["bn_beta"] - params["bn_mean"] * scale
    out = out * scale[None, :, None, None] + shift[None, :, None, None]
    # downsample: 1x1 / stride 2 conv + BN(eval)
    ident = jnp.einsum("nchw,co->nohw", x[:, :, ::2, ::2], params["wds"], precision=hi)
    ds_scale = params["ds_gamma"] / jnp.sqrt(params["ds_var"] + eps)
    ds_shift = params["ds_beta"] - params["ds_mean"] * ds_scale
    ident = ident * ds_scale[None, :, None, None] + ds_shift[None, :, None, None]
    out = out + ident
    return jnp.where(out > 0, out, 0.01 * out)


if __name__ == "__main__":
    in_ch, out_ch = 4, 8
    reduction = 2           # reduction=16 would give 0 hidden channels at in_ch=4
    N, H, W = 2, 16, 16

    key = jax.random.PRNGKey(0)
    k_x, k_p = jax.random.split(key)
    x = jax.random.normal(k_x, (N, in_ch, H, W), dtype=jnp.float32)
    params = init_params(k_p, in_ch, out_ch, reduction)
    folded = fold_params(params)

    # row_tile=4 exercises the spatial grid axis (2 row tiles/image) + halo path.
    out = pscse_with_cab(x, folded, in_ch=in_ch, out_ch=out_ch, row_tile=4)
    out = jax.block_until_ready(out)
    assert out.shape == (N, out_ch, H // 2, W // 2)

    # Numerical check against the pure-JAX f32 reference (bf16 matmul tolerance).
    ref = reference_forward(x, params)
    max_err = float(jnp.max(jnp.abs(out - ref)))
    assert max_err < 6e-2, f"kernel deviates from reference: max_err={max_err}"
    print("KERNEL_OK")
</pallas_src>

<mosaic_0001>
module attributes {stable_mosaic.version = 11 : i64} {
  func.func @fused_kernel(%arg0: i32, %arg1: i32, %arg2: memref<4x5x9x4xbf16, #tpu.memory_space<vmem>>, %arg3: memref<1x2x4xf32, #tpu.memory_space<vmem>>, %arg4: memref<36x8xbf16, #tpu.memory_space<vmem>>, %arg5: memref<4x8xbf16, #tpu.memory_space<vmem>>, %arg6: memref<3x8xf32, #tpu.memory_space<vmem>>, %arg7: memref<1x32x8xf32, #tpu.memory_space<vmem>>, %arg8: memref<32x36xf32, #tpu.memory_space<vmem>>) attributes {dimension_semantics = [#tpu.dimension_semantics<parallel>, #tpu.dimension_semantics<parallel>], iteration_bounds = array<i64: 2, 2>, scalar_prefetch = 0 : i64, scratch_operands = 1 : i64, tpu.core_type = #tpu.core_type<tc>, window_params = [{transform_indices = @transform_0, window_bounds = array<i64: 4, 5, 9, 4>}, {transform_indices = @transform_1, window_bounds = array<i64: 1, 2, 4>}, {pipeline_mode = #tpu.pipeline_mode<synchronous>, transform_indices = @transform_2, window_bounds = array<i64: 36, 8>}, {pipeline_mode = #tpu.pipeline_mode<synchronous>, transform_indices = @transform_3, window_bounds = array<i64: 4, 8>}, {pipeline_mode = #tpu.pipeline_mode<synchronous>, transform_indices = @transform_4, window_bounds = array<i64: 3, 8>}, {transform_indices = @transform_5, window_bounds = array<i64: 1, 32, 8>}]} {
    %c0 = arith.constant 0 : index
    %c0_0 = arith.constant 0 : index
    %c0_1 = arith.constant 0 : index
    %0 = vector.load %arg3[%c0, %c0_0, %c0_1] : memref<1x2x4xf32, #tpu.memory_space<vmem>>, vector<1x1x4xf32>
    %1 = vector.shape_cast %0 : vector<1x1x4xf32> to vector<1x4xf32>
    %2 = vector.shape_cast %1 : vector<1x4xf32> to vector<1x1x4xf32>
    %c0_2 = arith.constant 0 : index
    %c1 = arith.constant 1 : index
    %c0_3 = arith.constant 0 : index
    %3 = vector.load %arg3[%c0_2, %c1, %c0_3] : memref<1x2x4xf32, #tpu.memory_space<vmem>>, vector<1x1x4xf32>
    %4 = vector.shape_cast %3 : vector<1x1x4xf32> to vector<1x4xf32>
    %5 = vector.shape_cast %4 : vector<1x4xf32> to vector<1x1x4xf32>
    %c2 = arith.constant 2 : index
    %c0_4 = arith.constant 0 : index
    %6 = vector.load %arg6[%c2, %c0_4] : memref<3x8xf32, #tpu.memory_space<vmem>>, vector<1x1xf32>
    %c0_5 = arith.constant 0 : index
    %c0_6 = arith.constant 0 : index
    %c0_7 = arith.constant 0 : index
    %c0_8 = arith.constant 0 : index
    %7 = vector.load %arg2[%c0_5, %c0_6, %c0_7, %c0_8] : memref<4x5x9x4xbf16, #tpu.memory_space<vmem>>, vector<1x5x9x4xbf16>
    %8 = vector.shape_cast %7 : vector<1x5x9x4xbf16> to vector<5x9x4xbf16>
    %c1_9 = arith.constant 1 : index
    %c0_10 = arith.constant 0 : index
    %c0_11 = arith.constant 0 : index
    %c0_12 = arith.constant 0 : index
    %9 = vector.load %arg2[%c1_9, %c0_10, %c0_11, %c0_12] : memref<4x5x9x4xbf16, #tpu.memory_space<vmem>>, vector<1x5x9x4xbf16>
    %10 = vector.shape_cast %9 : vector<1x5x9x4xbf16> to vector<5x9x4xbf16>
    %c2_13 = arith.constant 2 : index
    %c0_14 = arith.constant 0 : index
    %c0_15 = arith.constant 0 : index
    %c0_16 = arith.constant 0 : index
    %11 = vector.load %arg2[%c2_13, %c0_14, %c0_15, %c0_16] : memref<4x5x9x4xbf16, #tpu.memory_space<vmem>>, vector<1x5x9x4xbf16>
    %12 = vector.shape_cast %11 : vector<1x5x9x4xbf16> to vector<5x9x4xbf16>
    %c3 = arith.constant 3 : index
    %c0_17 = arith.constant 0 : index
    %c0_18 = arith.constant 0 : index
    %c0_19 = arith.constant 0 : index
    %13 = vector.load %arg2[%c3, %c0_17, %c0_18, %c0_19] : memref<4x5x9x4xbf16, #tpu.memory_space<vmem>>, vector<1x5x9x4xbf16>
    %14 = vector.shape_cast %13 : vector<1x5x9x4xbf16> to vector<5x9x4xbf16>
    %15 = arith.extf %8 : vector<5x9x4xbf16> to vector<5x9x4xf32>
    %16 = vector.broadcast %5 : vector<1x1x4xf32> to vector<5x9x4xf32>
    %17 = arith.mulf %15, %16 : vector<5x9x4xf32>
    %cst = arith.constant dense<0.000000e+00> : vector<5x9xf32>
    %18 = vector.multi_reduction <add>, %17, %cst [2] : vector<5x9x4xf32> to vector<5x9xf32>
    %19 = vector.shape_cast %18 : vector<5x9xf32> to vector<5x9x1xf32>
    %20 = vector.shape_cast %6 : vector<1x1xf32> to vector<1x1x1xf32>
    %21 = vector.broadcast %20 : vector<1x1x1xf32> to vector<5x9x1xf32>
    %22 = arith.addf %19, %21 : vector<5x9x1xf32>
    %23 = arith.negf %22 : vector<5x9x1xf32>
    %24 = math.exp %23 : vector<5x9x1xf32>
    %cst_20 = arith.constant 1.000000e+00 : f32
    %25 = vector.broadcast %cst_20 : f32 to vector<5x9x1xf32>
    %26 = arith.addf %25, %24 : vector<5x9x1xf32>
    %27 = arith.divf %25, %26 : vector<5x9x1xf32>
    %28 = arith.extf %10 : vector<5x9x4xbf16> to vector<5x9x4xf32>
    %29 = vector.broadcast %5 : vector<1x1x4xf32> to vector<5x9x4xf32>
    %30 = arith.mulf %28, %29 : vector<5x9x4xf32>
    %cst_21 = arith.constant dense<0.000000e+00> : vector<5x9xf32>
    %31 = vector.multi_reduction <add>, %30, %cst_21 [2] : vector<5x9x4xf32> to vector<5x9xf32>
    %32 = vector.shape_cast %31 : vector<5x9xf32> to vector<5x9x1xf32>
    %33 = vector.shape_cast %6 : vector<1x1xf32> to vector<1x1x1xf32>
    %34 = vector.broadcast %33 : vector<1x1x1xf32> to vector<5x9x1xf32>
    %35 = arith.addf %32, %34 : vector<5x9x1xf32>
    %36 = arith.negf %35 : vector<5x9x1xf32>
    %37 = math.exp %36 : vector<5x9x1xf32>
    %cst_22 = arith.constant 1.000000e+00 : f32
    %38 = vector.broadcast %cst_22 : f32 to vector<5x9x1xf32>
    %39 = arith.addf %38, %37 : vector<5x9x1xf32>
    %40 = arith.divf %38, %39 : vector<5x9x1xf32>
    %41 = arith.extf %12 : vector<5x9x4xbf16> to vector<5x9x4xf32>
    %42 = vector.broadcast %5 : vector<1x1x4xf32> to vector<5x9x4xf32>
    %43 = arith.mulf %41, %42 : vector<5x9x4xf32>
    %cst_23 = arith.constant dense<0.000000e+00> : vector<5x9xf32>
    %44 = vector.multi_reduction <add>, %43, %cst_23 [2] : vector<5x9x4xf32> to vector<5x9xf32>
    %45 = vector.shape_cast %44 : vector<5x9xf32> to vector<5x9x1xf32>
    %46 = vector.shape_cast %6 : vector<1x1xf32> to vector<1x1x1xf32>
    %47 = vector.broadcast %46 : vector<1x1x1xf32> to vector<5x9x1xf32>
    %48 = arith.addf %45, %47 : vector<5x9x1xf32>
    %49 = arith.negf %48 : vector<5x9x1xf32>
    %50 = math.exp %49 : vector<5x9x1xf32>
    %cst_24 = arith.constant 1.000000e+00 : f32
    %51 = vector.broadcast %cst_24 : f32 to vector<5x9x1xf32>
    %52 = arith.addf %51, %50 : vector<5x9x1xf32>
    %53 = arith.divf %51, %52 : vector<5x9x1xf32>
    %54 = arith.extf %14 : vector<5x9x4xbf16> to vector<5x9x4xf32>
    %55 = vector.broadcast %5 : vector<1x1x4xf32> to vector<5x9x4xf32>
    %56 = arith.mulf %54, %55 : vector<5x9x4xf32>
    %cst_25 = arith.constant dense<0.000000e+00> : vector<5x9xf32>
    %57 = vector.multi_reduction <add>, %56, %cst_25 [2] : vector<5x9x4xf32> to vector<5x9xf32>
    %58 = vector.shape_cast %57 : vector<5x9xf32> to vector<5x9x1xf32>
    %59 = vector.shape_cast %6 : vector<1x1xf32> to vector<1x1x1xf32>
    %60 = vector.broadcast %59 : vector<1x1x1xf32> to vector<5x9x1xf32>
    %61 = arith.addf %58, %60 : vector<5x9x1xf32>
    %62 = arith.negf %61 : vector<5x9x1xf32>
    %63 = math.exp %62 : vector<5x9x1xf32>
    %cst_26 = arith.constant 1.000000e+00 : f32
    %64 = vector.broadcast %cst_26 : f32 to vector<5x9x1xf32>
    %65 = arith.addf %64, %63 : vector<5x9x1xf32>
    %66 = arith.divf %64, %65 : vector<5x9x1xf32>
    %67 = vector.extract_strided_slice %8 {offsets = [0, 0, 0], sizes = [4, 8, 4], strides = [1, 1, 1]} : vector<5x9x4xbf16> to vector<4x8x4xbf16>
    %68 = vector.extract_strided_slice %27 {offsets = [0, 0, 0], sizes = [4, 8, 1], strides = [1, 1, 1]} : vector<5x9x1xf32> to vector<4x8x1xf32>
    %69 = vector.broadcast %2 : vector<1x1x4xf32> to vector<4x8x4xf32>
    %70 = vector.broadcast %68 : vector<4x8x1xf32> to vector<4x8x4xf32>
    %71 = arith.addf %69, %70 : vector<4x8x4xf32>
    %72 = arith.extf %67 : vector<4x8x4xbf16> to vector<4x8x4xf32>
    %73 = arith.mulf %72, %71 : vector<4x8x4xf32>
    %74 = vector.shape_cast %73 : vector<4x8x4xf32> to vector<32x4xf32>
    %c0_27 = arith.constant 0 : index
    %c0_28 = arith.constant 0 : index
    %75 = vector.load %arg8[%c0_27, %c0_28] : memref<32x36xf32, #tpu.memory_space<vmem>>, vector<32x4xf32>
    tpu.vector_store %arg8[%c0_27, %c0_28], %74 {strides = array<i32>} : memref<32x36xf32, #tpu.memory_space<vmem>>, vector<32x4xf32>,
    %76 = vector.extract_strided_slice %10 {offsets = [0, 0, 0], sizes = [4, 8, 4], strides = [1, 1, 1]} : vector<5x9x4xbf16> to vector<4x8x4xbf16>
    %77 = vector.extract_strided_slice %40 {offsets = [0, 0, 0], sizes = [4, 8, 1], strides = [1, 1, 1]} : vector<5x9x1xf32> to vector<4x8x1xf32>
    %78 = vector.broadcast %2 : vector<1x1x4xf32> to vector<4x8x4xf32>
    %79 = vector.broadcast %77 : vector<4x8x1xf32> to vector<4x8x4xf32>
    %80 = arith.addf %78, %79 : vector<4x8x4xf32>
    %81 = arith.extf %76 : vector<4x8x4xbf16> to vector<4x8x4xf32>
    %82 = arith.mulf %81, %80 : vector<4x8x4xf32>
    %83 = vector.shape_cast %82 : vector<4x8x4xf32> to vector<32x4xf32>
    %c0_29 = arith.constant 0 : index
    %c4 = arith.constant 4 : index
    %84 = vector.load %arg8[%c0_29, %c4] : memref<32x36xf32, #tpu.memory_space<vmem>>, vector<32x4xf32>
    tpu.vector_store %arg8[%c0_29, %c4], %83 {strides = array<i32>} : memref<32x36xf32, #tpu.memory_space<vmem>>, vector<32x4xf32>,
    %85 = vector.extract_strided_slice %8 {offsets = [0, 1, 0], sizes = [4, 8, 4], strides = [1, 1, 1]} : vector<5x9x4xbf16> to vector<4x8x4xbf16>
    %86 = vector.extract_strided_slice %27 {offsets = [0, 1, 0], sizes = [4, 8, 1], strides = [1, 1, 1]} : vector<5x9x1xf32> to vector<4x8x1xf32>
    %87 = vector.broadcast %2 : vector<1x1x4xf32> to vector<4x8x4xf32>
    %88 = vector.broadcast %86 : vector<4x8x1xf32> to vector<4x8x4xf32>
    %89 = arith.addf %87, %88 : vector<4x8x4xf32>
    %90 = arith.extf %85 : vector<4x8x4xbf16> to vector<4x8x4xf32>
    %91 = arith.mulf %90, %89 : vector<4x8x4xf32>
    %92 = vector.shape_cast %91 : vector<4x8x4xf32> to vector<32x4xf32>
    %c0_30 = arith.constant 0 : index
    %c8 = arith.constant 8 : index
    %93 = vector.load %arg8[%c0_30, %c8] : memref<32x36xf32, #tpu.memory_space<vmem>>, vector<32x4xf32>
    tpu.vector_store %arg8[%c0_30, %c8], %92 {strides = array<i32>} : memref<32x36xf32, #tpu.memory_space<vmem>>, vector<32x4xf32>,
    %94 = vector.extract_strided_slice %12 {offsets = [0, 0, 0], sizes = [4, 8, 4], strides = [1, 1, 1]} : vector<5x9x4xbf16> to vector<4x8x4xbf16>
    %95 = vector.extract_strided_slice %53 {offsets = [0, 0, 0], sizes = [4, 8, 1], strides = [1, 1, 1]} : vector<5x9x1xf32> to vector<4x8x1xf32>
    %96 = vector.broadcast %2 : vector<1x1x4xf32> to vector<4x8x4xf32>
    %97 = vector.broadcast %95 : vector<4x8x1xf32> to vector<4x8x4xf32>
    %98 = arith.addf %96, %97 : vector<4x8x4xf32>
    %99 = arith.extf %94 : vector<4x8x4xbf16> to vector<4x8x4xf32>
    %100 = arith.mulf %99, %98 : vector<4x8x4xf32>
    %101 = vector.shape_cast %100 : vector<4x8x4xf32> to vector<32x4xf32>
    %c0_31 = arith.constant 0 : index
    %c12 = arith.constant 12 : index
    %102 = vector.load %arg8[%c0_31, %c12] : memref<32x36xf32, #tpu.memory_space<vmem>>, vector<32x4xf32>
    tpu.vector_store %arg8[%c0_31, %c12], %101 {strides = array<i32>} : memref<32x36xf32, #tpu.memory_space<vmem>>, vector<32x4xf32>,
    %103 = vector.extract_strided_slice %14 {offsets = [0, 0, 0], sizes = [4, 8, 4], strides = [1, 1, 1]} : vector<5x9x4xbf16> to vector<4x8x4xbf16>
    %104 = vector.extract_strided_slice %66 {offsets = [0, 0, 0], sizes = [4, 8, 1], strides = [1, 1, 1]} : vector<5x9x1xf32> to vector<4x8x1xf32>
    %105 = vector.broadcast %2 : vector<1x1x4xf32> to vector<4x8x4xf32>
    %106 = vector.broadcast %104 : vector<4x8x1xf32> to vector<4x8x4xf32>
    %107 = arith.addf %105, %106 : vector<4x8x4xf32>
    %108 = arith.extf %103 : vector<4x8x4xbf16> to vector<4x8x4xf32>
    %109 = arith.mulf %108, %107 : vector<4x8x4xf32>
    %110 = vector.shape_cast %109 : vector<4x8x4xf32> to vector<32x4xf32>
    %c0_32 = arith.constant 0 : index
    %c16 = arith.constant 16 : index
    %111 = vector.load %arg8[%c0_32, %c16] : memref<32x36xf32, #tpu.memory_space<vmem>>, vector<32x4xf32>
    tpu.vector_store %arg8[%c0_32, %c16], %110 {strides = array<i32>} : memref<32x36xf32, #tpu.memory_space<vmem>>, vector<32x4xf32>,
    %112 = vector.extract_strided_slice %12 {offsets = [0, 1, 0], sizes = [4, 8, 4], strides = [1, 1, 1]} : vector<5x9x4xbf16> to vector<4x8x4xbf16>
    %113 = vector.extract_strided_slice %53 {offsets = [0, 1, 0], sizes = [4, 8, 1], strides = [1, 1, 1]} : vector<5x9x1xf32> to vector<4x8x1xf32>
    %114 = vector.broadcast %2 : vector<1x1x4xf32> to vector<4x8x4xf32>
    %115 = vector.broadcast %113 : vector<4x8x1xf32> to vector<4x8x4xf32>
    %116 = arith.addf %114, %115 : vector<4x8x4xf32>
    %117 = arith.extf %112 : vector<4x8x4xbf16> to vector<4x8x4xf32>
    %118 = arith.mulf %117, %116 : vector<4x8x4xf32>
    %119 = vector.shape_cast %118 : vector<4x8x4xf32> to vector<32x4xf32>
    %c0_33 = arith.constant 0 : index
    %c20 = arith.constant 20 : index
    %120 = vector.load %arg8[%c0_33, %c20] : memref<32x36xf32, #tpu.memory_space<vmem>>, vector<32x4xf32>
    tpu.vector_store %arg8[%c0_33, %c20], %119 {strides = array<i32>} : memref<32x36xf32, #tpu.memory_space<vmem>>, vector<32x4xf32>,
    %121 = vector.extract_strided_slice %8 {offsets = [1, 0, 0], sizes = [4, 8, 4], strides = [1, 1, 1]} : vector<5x9x4xbf16> to vector<4x8x4xbf16>
    %122 = vector.extract_strided_slice %27 {offsets = [1, 0, 0], sizes = [4, 8, 1], strides = [1, 1, 1]} : vector<5x9x1xf32> to vector<4x8x1xf32>
    %123 = vector.broadcast %2 : vector<1x1x4xf32> to vector<4x8x4xf32>
    %124 = vector.broadcast %122 : vector<4x8x1xf32> to vector<4x8x4xf32>
    %125 = arith.addf %123, %124 : vector<4x8x4xf32>
    %126 = arith.extf %121 : vector<4x8x4xbf16> to vector<4x8x4xf32>
    %127 = arith.mulf %126, %125 : vector<4x8x4xf32>
    %128 = vector.shape_cast %127 : vector<4x8x4xf32> to vector<32x4xf32>
    %c0_34 = arith.constant 0 : index
    %c24 = arith.constant 24 : index
    %129 = vector.load %arg8[%c0_34, %c24] : memref<32x36xf32, #tpu.memory_space<vmem>>, vector<32x4xf32>
    tpu.vector_store %arg8[%c0_34, %c24], %128 {strides = array<i32>} : memref<32x36xf32, #tpu.memory_space<vmem>>, vector<32x4xf32>,
    %130 = vector.extract_strided_slice %10 {offsets = [1, 0, 0], sizes = [4, 8, 4], strides = [1, 1, 1]} : vector<5x9x4xbf16> to vector<4x8x4xbf16>
    %131 = vector.extract_strided_slice %40 {offsets = [1, 0, 0], sizes = [4, 8, 1], strides = [1, 1, 1]} : vector<5x9x1xf32> to vector<4x8x1xf32>
    %132 = vector.broadcast %2 : vector<1x1x4xf32> to vector<4x8x4xf32>
    %133 = vector.broadcast %131 : vector<4x8x1xf32> to vector<4x8x4xf32>
    %134 = arith.addf %132, %133 : vector<4x8x4xf32>
    %135 = arith.extf %130 : vector<4x8x4xbf16> to vector<4x8x4xf32>
    %136 = arith.mulf %135, %134 : vector<4x8x4xf32>
    %137 = vector.shape_cast %136 : vector<4x8x4xf32> to vector<32x4xf32>
    %c0_35 = arith.constant 0 : index
    %c28 = arith.constant 28 : index
    %138 = vector.load %arg8[%c0_35, %c28] : memref<32x36xf32, #tpu.memory_space<vmem>>, vector<32x4xf32>
    tpu.vector_store %arg8[%c0_35, %c28], %137 {strides = array<i32>} : memref<32x36xf32, #tpu.memory_space<vmem>>, vector<32x4xf32>,
    %139 = vector.extract_strided_slice %8 {offsets = [1, 1, 0], sizes = [4, 8, 4], strides = [1, 1, 1]} : vector<5x9x4xbf16> to vector<4x8x4xbf16>
    %140 = vector.extract_strided_slice %27 {offsets = [1, 1, 0], sizes = [4, 8, 1], strides = [1, 1, 1]} : vector<5x9x1xf32> to vector<4x8x1xf32>
    %141 = vector.broadcast %2 : vector<1x1x4xf32> to vector<4x8x4xf32>
    %142 = vector.broadcast %140 : vector<4x8x1xf32> to vector<4x8x4xf32>
    %143 = arith.addf %141, %142 : vector<4x8x4xf32>
    %144 = arith.extf %139 : vector<4x8x4xbf16> to vector<4x8x4xf32>
    %145 = arith.mulf %144, %143 : vector<4x8x4xf32>
    %146 = vector.shape_cast %145 : vector<4x8x4xf32> to vector<32x4xf32>
    %c0_36 = arith.constant 0 : index
    %c32 = arith.constant 32 : index
    %147 = vector.load %arg8[%c0_36, %c32] : memref<32x36xf32, #tpu.memory_space<vmem>>, vector<32x4xf32>
    tpu.vector_store %arg8[%c0_36, %c32], %146 {strides = array<i32>} : memref<32x36xf32, #tpu.memory_space<vmem>>, vector<32x4xf32>,
    %c0_37 = arith.constant 0 : index
    %c0_38 = arith.constant 0 : index
    %148 = vector.load %arg8[%c0_37, %c0_38] : memref<32x36xf32, #tpu.memory_space<vmem>>, vector<32x36xf32>
    %149 = arith.truncf %148 : vector<32x36xf32> to vector<32x36xbf16>
    %c0_39 = arith.constant 0 : index
    %c0_40 = arith.constant 0 : index
    %150 = vector.load %arg4[%c0_39, %c0_40] : memref<36x8xbf16, #tpu.memory_space<vmem>>, vector<36x8xbf16>
    %cst_41 = arith.constant dense<0.000000e+00> : vector<32x8xf32>
    %151 = tpu.matmul %149, %150, %cst_41 {dimension_numbers = #tpu.dot_dimension_numbers<[1], [0], [0], [1], [0, 0, 1, 1], [], []>} : vector<32x36xbf16>, vector<36x8xbf16>, vector<32x8xf32> -> vector<32x8xf32>
    %c0_42 = arith.constant 0 : index
    %c0_43 = arith.constant 0 : index
    %152 = vector.load %arg6[%c0_42, %c0_43] : memref<3x8xf32, #tpu.memory_space<vmem>>, vector<1x8xf32>
    %153 = vector.broadcast %152 : vector<1x8xf32> to vector<32x8xf32>
    %154 = arith.addf %151, %153 : vector<32x8xf32>
    %cst_44 = arith.constant 0.000000e+00 : f32
    %155 = vector.broadcast %cst_44 : f32 to vector<32x8xf32>
    %156 = arith.cmpf ogt, %154, %155 : vector<32x8xf32>
    %cst_45 = arith.constant 0.00999999977 : f32
    %157 = vector.broadcast %cst_45 : f32 to vector<32x8xf32>
    %158 = arith.mulf %157, %154 : vector<32x8xf32>
    %159 = arith.select %156, %154, %158 : vector<32x8xi1>, vector<32x8xf32>
    %160 = vector.extract_strided_slice %14 {offsets = [0, 0, 0], sizes = [4, 8, 4], strides = [1, 1, 1]} : vector<5x9x4xbf16> to vector<4x8x4xbf16>
    %161 = vector.shape_cast %160 : vector<4x8x4xbf16> to vector<32x4xbf16>
    %c0_46 = arith.constant 0 : index
    %c0_47 = arith.constant 0 : index
    %162 = vector.load %arg5[%c0_46, %c0_47] : memref<4x8xbf16, #tpu.memory_space<vmem>>, vector<4x8xbf16>
    %cst_48 = arith.constant dense<0.000000e+00> : vector<32x8xf32>
    %163 = tpu.matmul %161, %162, %cst_48 {dimension_numbers = #tpu.dot_dimension_numbers<[1], [0], [0], [1], [0, 0, 1, 1], [], []>} : vector<32x4xbf16>, vector<4x8xbf16>, vector<32x8xf32> -> vector<32x8xf32>
    %164 = arith.addf %159, %163 : vector<32x8xf32>
    %c1_49 = arith.constant 1 : index
    %c0_50 = arith.constant 0 : index
    %165 = vector.load %arg6[%c1_49, %c0_50] : memref<3x8xf32, #tpu.memory_space<vmem>>, vector<1x8xf32>
    %166 = vector.broadcast %165 : vector<1x8xf32> to vector<32x8xf32>
    %167 = arith.addf %164, %166 : vector<32x8xf32>
    %cst_51 = arith.constant 0.000000e+00 : f32
    %168 = vector.broadcast %cst_51 : f32 to vector<32x8xf32>
    %169 = arith.cmpf ogt, %167, %168 : vector<32x8xf32>
    %cst_52 = arith.constant 0.00999999977 : f32
    %170 = vector.broadcast %cst_52 : f32 to vector<32x8xf32>
    %171 = arith.mulf %170, %167 : vector<32x8xf32>
    %172 = arith.select %169, %167, %171 : vector<32x8xi1>, vector<32x8xf32>
    %c0_53 = arith.constant 0 : index
    %c0_54 = arith.constant 0 : index
    %c0_55 = arith.constant 0 : index
    %173 = vector.load %arg7[%c0_53, %c0_54, %c0_55] : memref<1x32x8xf32, #tpu.memory_space<vmem>>, vector<1x32x8xf32>
    %174 = vector.shape_cast %173 : vector<1x32x8xf32> to vector<32x8xf32>
    %175 = vector.shape_cast %172 : vector<32x8xf32> to vector<1x32x8xf32>
    tpu.vector_store %arg7[%c0_53, %c0_54, %c0_55], %175 {strides = array<i32>} : memref<1x32x8xf32, #tpu.memory_space<vmem>>, vector<1x32x8xf32>,
    return
  }
  func.func @transform_0(%arg0: i32, %arg1: i32) -> (i32, i32, i32, i32) {
    %c2_i32 = arith.constant 2 : i32
    %0 = arith.muli %arg0, %c2_i32 : i32
    %1 = arith.addi %0, %arg1 : i32
    %c0_i32 = arith.constant 0 : i32
    %c0_i32_0 = arith.constant 0 : i32
    %c0_i32_1 = arith.constant 0 : i32
    %c0_i32_2 = arith.constant 0 : i32
    return %1, %c0_i32, %c0_i32_0, %c0_i32_1 : i32, i32, i32, i32
  }
  func.func @transform_1(%arg0: i32, %arg1: i32) -> (i32, i32, i32) {
    %c0_i32 = arith.constant 0 : i32
    %c0_i32_0 = arith.constant 0 : i32
    %c0_i32_1 = arith.constant 0 : i32
    return %arg0, %c0_i32, %c0_i32_0 : i32, i32, i32
  }
  func.func @transform_2(%arg0: i32, %arg1: i32) -> (i32, i32) {
    %c0_i32 = arith.constant 0 : i32
    %c0_i32_0 = arith.constant 0 : i32
    %c0_i32_1 = arith.constant 0 : i32
    return %c0_i32, %c0_i32_0 : i32, i32
  }
  func.func @transform_3(%arg0: i32, %arg1: i32) -> (i32, i32) {
    %c0_i32 = arith.constant 0 : i32
    %c0_i32_0 = arith.constant 0 : i32
    %c0_i32_1 = arith.constant 0 : i32
    return %c0_i32, %c0_i32_0 : i32, i32
  }
  func.func @transform_4(%arg0: i32, %arg1: i32) -> (i32, i32) {
    %c0_i32 = arith.constant 0 : i32
    %c0_i32_0 = arith.constant 0 : i32
    %c0_i32_1 = arith.constant 0 : i32
    return %c0_i32, %c0_i32_0 : i32, i32
  }
  func.func @transform_5(%arg0: i32, %arg1: i32) -> (i32, i32, i32) {
    %c0_i32 = arith.constant 0 : i32
    %c0_i32_0 = arith.constant 0 : i32
    return %arg0, %arg1, %c0_i32 : i32, i32, i32
  }
}

</mosaic_0001>

<bundles_post_ra>
// kernel: pscse_with_cab.1
= control target key start
LH: loop header
LB: loop body
LE: loop exit
PB: predicated region body
PF: predicated region fallthrough
CT: control target
= control target key end

     0   :  { %s1681_s18 = smov 0   ;;  %s1683_s19 = smov 0   ;;  %s2202_s0 = inlined_call_operand.vmem [shape: bf16[16,5,9,4], index: 0, kind: input, shape index: {}]   ;;  %s2203_s1 = inlined_call_operand.vmem [shape: f32[2,2,4], index: 1, kind: input, shape index: {}]   ;;  %s2204_s2 = inlined_call_operand.vmem [shape: bf16[36,8], index: 2, kind: input, shape index: {}]   ;;  %s2205_s3 = inlined_call_operand.vmem [shape: bf16[4,8], index: 3, kind: input, shape index: {}]   ;;  %s2206_s4 = inlined_call_operand.vmem [shape: f32[3,8], index: 4, kind: input, shape index: {}]   ;;  %s2207_s5 = inlined_call_operand.vmem [shape: f32[2,64,8], index: 5, kind: output, shape index: {}]  }
   0x1   :  { %s1685_s20 = smov 0   ;;  %s1687_s21 = smov 0  }
   0x2   :  { %s1689_s22 = smov 0  }
   0x3 LB: > { %s24_s23 = sadd.s32 1, %s1632_s20  ;;  %s27_s24 = sadd.s32 1, %s1636_s21  ;;  %s1640_s22 = sphi %s1689_s22, %s15_s22   ;;  %s1636_s21 = sphi %s1687_s21, %s2224_s21   ;;  %s1632_s20 = sphi %s1685_s20, %s2223_s20   ;;  %s1628_s19 = sphi %s1683_s19, %s2222_s19   ;;  %s1624_s18 = sphi %s1681_s18, %s2221_s18  }
   0x4   : > { %p25_p0 = scmp.ge.s32.totalorder %s24_s23, 2  ;;  %p1344_p1 = scmp.ge.s32.totalorder %s1640_s22, 1 }
   0x5   : > { %p220_p2 = scmp.lt.s32.totalorder %s1640_s22, 5 }
   0x6   : > { %s2226_s23 = smov (%p25_p0, %s24_s23), 0  ;;  %s2228_s24 = smov (!%p25_p0, %s27_s24), %s1636_s21 }
   0x7   : > { %p221_p3 = pnand %p1344_p1, %p220_p2  ;;  %p29_p4 = scmp.ge.s32.totalorder %s2228_s24, 2 }
   0x8   : > { %s1345_s25 = sshll.u32 (!%p221_p3), %s1628_s19, 1  ;;  %p270_p5 = scmp.lt.s32.totalorder (!%p221_p3), %s1628_s19, 1 }
   0x9   : > { %s2230_s24 = smov (%p29_p4, %s2228_s24), 0  ;;  %224 = sbr.rel (%p221_p3) target bundleno = 762 (0x2fa), region = 40 }
   0xa   : > { %s260_s26 = sadd.s32 (!%p221_p3), %s1624_s18, %s1345_s25  ;;  %s1643_s13 = smov (!%p221_p3), 4  }
   0xb   : > { %s1346_s27 = sshll.u32 (!%p221_p3), %s260_s26, 2  ;;  %s1644_s14 = smov (!%p221_p3), 12  }
   0xc   : > { %p262_p6 = scmp.lt.s32.totalorder (!%p221_p3), %s1346_s27, 15  ;;  %s1645_s15 = smov (!%p221_p3), 16  }
   0xd   : > { %s1646_s16 = smov (!%p221_p3), 24   ;;  %s1647_s17 = smov (!%p221_p3), 28  }
   0xe   : > { %s2232_s19 = smov (!%p270_p5, %s1628_s19), 1  ;;  %s2234_s27 = smov (!%p262_p6, %s1346_s27), 15  ;;  %vm342_vm0 = vcmask 31744   ;;  %vm346_vm1 = vcmask 24576   ;;  %vm773_vm2 = vcmask 1046528   ;;  %vm1078_vm3 = vcmask 1041408  }
   0xf   : > { %s1348_s28 = sshll.u32 %s2232_s19, 1  ;;  %s1438_s29 = smul.u32 40, %s2234_s27  ;;  %vm732_vm4 = vcmask 64544   ;;  %vm798_vm5 = vcmask 97344   ;;  %vm847_vm6 = vcmask 130144   ;;  %vm896_vm7 = vcmask 162944  }
  0x10   : > { %s1720_s7 = scalar_lea.vmem %s2203_s1, %s1348_s28  ;;  %s1648_s25 = smov 8   ;;  %vm957_vm8 = vcmask 195744   ;;  %vm982_vm9 = vcmask 228544   ;;  %vm1007_vm10 = vcmask 261344   ;;  %vm1035_vm11 = vcmask 294144  }
  0x11   : > { %s1725_s10 = scalar_lea.vmem %s2202_s0, %s1438_s29  ;;  %v1728_v0 = vld [vmem:[%s1720_s7 + $0x1] ss:$0 sm:$0xff]  ;;  %s1649_s26 = smov 20   ;;  %vm1071_vm12 = vcmask 293888  }
  0x12   : > { %v1731_v1 = vld [vmem:[%s1725_s10] ss:$8 sps:$4 sm:$0xff]   ;;  %v1734_v2 = vld [vmem:[%s1725_s10 + $0x4] sm:$0x1]  ;;  %v1737_v3 = vld [vmem:[%s1725_s10 + $0xc] sm:$0x1] }
  0x13   : > { %v318_v4 = vunpack.c.l.bf16 %v1731_v1  ;;  %v320_v5 = vunpack.c.h.bf16 %v1731_v1  ;;  %v319_v6 = vunpack.c.l.bf16 %v1734_v2  ;;  %v321_v7 = vunpack.c.l.bf16 %v1737_v3  ;;  %v1744_v8 = vld [vmem:[%s1725_s10 + $0x10] ss:$8 sps:$4 sm:$0xff]   ;;  %v1747_v9 = vld [vmem:[%s1725_s10 + $0x14] sm:$0x1]  ;;  %v1764_v16 = vld [vmem:[%s1725_s10 + $0x1c] sm:$0x1] }
  0x14   : > { %v322_v10 = vunpack.c.l.bf16 %v1744_v8  ;;  %v323_v11 = vunpack.c.l.bf16 %v1747_v9  ;;  %v324_v19 = vunpack.c.h.bf16 %v1744_v8  ;;  %v325_v20 = vunpack.c.l.bf16 %v1764_v16  ;;  %v1779_v25 = vld [vmem:[%s1725_s10 + $0x28] ss:$8 sps:$4 sm:$0xff]   ;;  %v1792_v32 = vld [vmem:[%s1725_s10 + $0x38] ss:$8 sps:$4 sm:$0xff]   ;;  %v1808_v40 = vld [vmem:[%s1725_s10 + $0x54] sm:$0x1] }
  0x15   : > { %v332_v12 = vmul.f32 %v1728_v0, %v318_v4  ;;  %v334_v13 = vmul.f32 %v1728_v0, %v320_v5  ;;  %v333_v14 = vmul.f32 %v1728_v0, %v319_v6  ;;  %v335_v15 = vmul.f32 %v1728_v0, %v321_v7  ;;  %v1805_v39 = vld [vmem:[%s1725_s10 + $0x50] ss:$8 sps:$4 sm:$0xff]   ;;  %v1816_v44 = vld [vmem:[%s1725_s10 + $0x88] sm:$0xf]  ;;  %v1827_v49 = vld [vmem:[%s1725_s10 + $0x5c] sm:$0x1] }
  0x16   : > { %v336_v23 = vmul.f32 %v1728_v0, %v322_v10  ;;  %v337_v24 = vmul.f32 %v1728_v0, %v323_v11  ;;  %v338_v26 = vmul.f32 %v1728_v0, %v324_v19  ;;  %v339_v27 = vmul.f32 %v1728_v0, %v325_v20  ;;  %v1819_v45 = vld [vmem:[%s1725_s10 + $0x90] sm:$0xf]  ;;  %v1842_v57 = vld [vmem:[%s1725_s10 + $0x60] ss:$8 sps:$4 sm:$0xff]   ;;  %v1845_v58 = vld [vmem:[%s1725_s10 + $0x64] sm:$0x1] }
  0x17   : > { %v343_v17 = vsel %vm342_vm0, %v332_v12, 0.0  ;;  %v350_v18 = vsel %vm342_vm0, %v334_v13, 0.0  ;;  %v347_v21 = vsel %vm346_vm1, %v333_v14, 0.0  ;;  %v353_v22 = vsel %vm346_vm1, %v335_v15, 0.0  ;;  %v1858_v13 = vld [vmem:[%s1725_s10 + $0x6c] sm:$0x1] }
  0x18   : > { %344 = vadd.xlane.f32.xlu0 %v343_v17  ;;  %351 = vadd.xlane.f32.xlu1 %v350_v18  ;;  %v356_v28 = vsel %vm342_vm0, %v336_v23, 0.0  ;;  %v359_v29 = vsel %vm346_vm1, %v337_v24, 0.0  ;;  %v448_v30 = vunpack.c.l.bf16 %v1779_v25  ;;  %v449_v31 = vunpack.c.h.bf16 %v1779_v25  ;;  %v1874_v24 = vld [vmem:[%s1725_s10 + $0x80] sm:$0xf]  ;;  %s1650_s29 = smov 32   ;;  %s1349_s11 = sshll.u32 %s1624_s18, 2 }
  0x19   : > { %v362_v33 = vsel %vm342_vm0, %v338_v26, 0.0  ;;  %v450_v34 = vunpack.c.l.bf16 %v1792_v32  ;;  %v365_v35 = vsel %vm346_vm1, %v339_v27, 0.0  ;;  %v451_v38 = vunpack.c.h.bf16 %v1792_v32  ;;  %p277_p7 = scmp.lt.s32.totalorder %s1349_s11, 7 }
  0x1a   : > { %v453_v36 = vmul.f32 %v1728_v0, %v448_v30  ;;  %v454_v37 = vmul.f32 %v1728_v0, %v449_v31  ;;  %v508_v42 = vunpack.c.l.bf16 %v1805_v39  ;;  %v2213_v43 = vunpack.c.l.bf16 %v1808_v40 }
  0x1b   : > { %v455_v41 = vmul.f32 %v1728_v0, %v450_v34  ;;  %v456_v48 = vmul.f32 %v1728_v0, %v451_v38  ;;  %v510_v51 = vunpack.c.h.bf16 %v1805_v39  ;;  %v2210_v52 = vunpack.c.l.bf16 %v1827_v49  ;;  %s2236_s11 = smov (!%p277_p7, %s1349_s11), 7 }
  0x1c   : > { %348 = vadd.xlane.f32.xlu0 %v347_v21  ;;  %354 = vadd.xlane.f32.xlu1 %v353_v22  ;;  %v458_v46 = vsel %vm342_vm0, %v453_v36, 0.0  ;;  %v461_v47 = vsel %vm342_vm0, %v454_v37, 0.0  ;;  %v516_v55 = vmul.f32 %v1728_v0, %v508_v42  ;;  %v517_v56 = vmul.f32 %v1728_v0, %v2213_v43  ;;  %v1870_v22 = vld [vmem:[%s1725_s10 + $0x78] sm:$0xf] }
  0x1d   : > { %v464_v53 = vsel %vm342_vm0, %v455_v41, 0.0  ;;  %v467_v54 = vsel %vm342_vm0, %v456_v48, 0.0  ;;  %v518_v59 = vmul.f32 %v1728_v0, %v510_v51  ;;  %v512_v60 = vunpack.c.l.bf16 %v1842_v57 }
  0x1e   : > { %v524_v61 = vsel %vm342_vm0, %v516_v55, 0.0  ;;  %v527_v62 = vsel %vm346_vm1, %v517_v56, 0.0  ;;  %v519_v63 = vmul.f32 %v1728_v0, %v2210_v52  ;;  %v2212_v12 = vunpack.c.l.bf16 %v1845_v58 }
  0x1f   : > { %v530_v14 = vsel %vm342_vm0, %v518_v59, 0.0  ;;  %v520_v15 = vmul.f32 %v1728_v0, %v512_v60  ;;  %v514_v21 = vunpack.c.h.bf16 %v1842_v57  ;;  %v2209_v23 = vunpack.c.l.bf16 %v1858_v13 }
  0x20   : > { %357 = vadd.xlane.f32.xlu0 %v356_v28  ;;  %360 = vadd.xlane.f32.xlu1 %v359_v29  ;;  %v533_v17 = vsel %vm346_vm1, %v519_v63, 0.0  ;;  %v521_v18 = vmul.f32 %v1728_v0, %v2212_v12  ;;  %v604_v27 = vunpack.c.l.bf16 %v1870_v22  ;;  %v606_v37 = vunpack.c.l.bf16 %v1816_v44 }
  0x21   : > { %v536_v26 = vsel %vm342_vm0, %v520_v15, 0.0  ;;  %v522_v29 = vmul.f32 %v1728_v0, %v514_v21 }
  0x22   : > { %v539_v28 = vsel %vm346_vm1, %v521_v18, 0.0  ;;  %v608_v36 = vmul.f32 %v1728_v0, %v604_v27  ;;  %v610_v55 = vmul.f32 %v1728_v0, %v606_v37 }
  0x23   : > { %v542_v41 = vsel %vm342_vm0, %v522_v29, 0.0 }
  0x24   : > { %363 = vadd.xlane.f32.xlu0 %v362_v33  ;;  %366 = vadd.xlane.f32.xlu1 %v365_v35  ;;  %v523_v33 = vmul.f32 %v1728_v0, %v2209_v23  ;;  %v605_v35 = vunpack.c.l.bf16 %v1874_v24  ;;  %v612_v59 = vsel %vm342_vm0, %v608_v36, 0.0  ;;  %v618_v15 = vsel %vm342_vm0, %v610_v55, 0.0 }
  0x25   : > { %v1642_v36 = vmov 0  }
  0x26   : > { %v609_v48 = vmul.f32 %v1728_v0, %v605_v35  ;;  %1488 = vset.pattern.permute.xlu1 %v1642_v36  ;;  %1489 = vset.pattern.permute.xlu0 %v1642_v36 }
  0x28   : > { %459 = vadd.xlane.f32.xlu0 %v458_v46  ;;  %462 = vadd.xlane.f32.xlu1 %v461_v47  ;;  %v1892_v46 = vld [vmem:[%s1725_s10 + $0x20] ss:$40 sps:$4 sm:$0xff]   ;;  %v545_v47 = vsel %vm346_vm1, %v523_v33, 0.0 }
  0x29   : > { %v326_v56 = vunpack.c.l.bf16 %v1892_v46 }
  0x2c   : > { %465 = vadd.xlane.f32.xlu0 %v464_v53  ;;  %468 = vadd.xlane.f32.xlu1 %v467_v54  ;;  %v607_v53 = vunpack.c.l.bf16 %v1819_v45  ;;  %v1900_v54 = vld [vmem:[%s1725_s10 + $0x24] sm:$0x1] }
  0x2d   : > { %v2208_v63 = vunpack.c.l.bf16 %v1900_v54 }
  0x30   : > { %525 = vadd.xlane.f32.xlu0 %v524_v61  ;;  %528 = vadd.xlane.f32.xlu1 %v527_v62  ;;  %v615_v61 = vsel %vm342_vm0, %v609_v48, 0.0  ;;  %v611_v62 = vmul.f32 %v1728_v0, %v607_v53 }
  0x32   : > { %v621_v18 = vsel %vm342_vm0, %v611_v62, 0.0 }
  0x34   : > { %531 = vadd.xlane.f32.xlu0 %v530_v14  ;;  %534 = vadd.xlane.f32.xlu1 %v533_v17  ;;  %v340_v14 = vmul.f32 %v1728_v0, %v326_v56  ;;  %v2211_v17 = vunpack.c.h.bf16 %v1892_v46 }
  0x36   : > { %v457_v29 = vmul.f32 %v1728_v0, %v2211_v17 }
  0x38   : > { %537 = vadd.xlane.f32.xlu0 %v536_v26  ;;  %540 = vadd.xlane.f32.xlu1 %v539_v28  ;;  %v341_v26 = vmul.f32 %v1728_v0, %v2208_v63  ;;  %v368_v28 = vsel %vm342_vm0, %v340_v14, 0.0 }
  0x3a   : > { %v371_v33 = vsel %vm346_vm1, %v341_v26, 0.0 }
  0x3c   : > { %543 = vadd.xlane.f32.xlu0 %v542_v41  ;;  %546 = vadd.xlane.f32.xlu1 %v545_v47  ;;  %v470_v41 = vsel %vm342_vm0, %v457_v29, 0.0  ;;  %v1930_v47 = vld [vmem:[%s2206_s4 + $0x2] ss:$0 sm:$0xff] }
  0x40   : > { %613 = vadd.xlane.f32.xlu0 %v612_v59  ;;  %616 = vadd.xlane.f32.xlu1 %v615_v61 }
  0x44   : > { %619 = vadd.xlane.f32.xlu0 %v618_v15  ;;  %622 = vadd.xlane.f32.xlu1 %v621_v18 }
  0x48   : > { %369 = vadd.xlane.f32.xlu0 %v368_v28  ;;  %372 = vadd.xlane.f32.xlu1 %v371_v33 }
  0x4c   : > { %471 = vadd.xlane.f32.xlu0 %v470_v41 }
  0xa1   : > { %v345_v48 = vpop.xlane.xlu0 %344  ;;  %v352_v55 = vpop.xlane.xlu1 %351 }
  0xa2   : > { %v378_v59 = vadd.f32 %v1930_v47, %v345_v48  ;;  %v380_v0 = vadd.f32 %v1930_v47, %v352_v55 }
  0xa4   : > { %v1371_v61 = vmul.f32 -1.442695, %v378_v59  ;;  %v1373_v62 = vmul.f32 -1.442695, %v380_v0 }
  0xa5   : > { %v349_v14 = vpop.xlane.xlu0 %348  ;;  %v355_v15 = vpop.xlane.xlu1 %354 }
  0xa6   : > { %1494 = vpow2.f32 %v1371_v61  ;;  %v379_v18 = vadd.f32 %v1930_v47, %v349_v14  ;;  %v381_v26 = vadd.f32 %v1930_v47, %v355_v15 }
  0xa7   : > { %1496 = vpow2.f32 %v1373_v62 }
  0xa8   : > { %v1372_v28 = vmul.f32 -1.442695, %v379_v18  ;;  %v1374_v29 = vmul.f32 -1.442695, %v381_v26 }
  0xa9   : > { %v358_v33 = vpop.xlane.xlu0 %357  ;;  %v361_v36 = vpop.xlane.xlu1 %360 }
  0xaa   : > { %1498 = vpow2.f32 %v1372_v28  ;;  %v382_v41 = vadd.f32 %v1930_v47, %v358_v33  ;;  %v383_v55 = vadd.f32 %v1930_v47, %v361_v36 }
  0xab   : > { %1500 = vpow2.f32 %v1374_v29 }
  0xac   : > { %v1375_v48 = vmul.f32 -1.442695, %v382_v41  ;;  %v1376_v15 = vmul.f32 -1.442695, %v383_v55 }
  0xad   : > { %v364_v59 = vpop.xlane.xlu0 %363  ;;  %v367_v0 = vpop.xlane.xlu1 %366 }
  0xae   : > { %1502 = vpow2.f32 %v1375_v48  ;;  %v384_v61 = vadd.f32 %v1930_v47, %v364_v59  ;;  %v385_v14 = vadd.f32 %v1930_v47, %v367_v0 }
  0xb0   : > { %v1377_v62 = vmul.f32 -1.442695, %v384_v61  ;;  %v1378_v18 = vmul.f32 -1.442695, %v385_v14 }
  0xb1   : > { %v460_v26 = vpop.xlane.xlu0 %459  ;;  %v463_v50 = vpop.xlane.xlu1 %462 }
  0xb2   : > { %1504 = vpow2.f32 %v1377_v62  ;;  %v473_v28 = vadd.f32 %v1930_v47, %v460_v26  ;;  %v474_v48 = vadd.f32 %v1930_v47, %v463_v50 }
  0xb3   : > { %v1495_v33 = vpop.eup %1494  ;;  %1506 = vpow2.f32 %v1376_v15 }
  0xb4   : > { %v1497_v29 = vpop.eup %1496  ;;  %v418_v41 = vadd.f32 1.0, %v1495_v33  ;;  %1508 = vpow2.f32 %v1378_v18  ;;  %v1381_v63 = vmul.f32 -1.442695, %v473_v28  ;;  %v1382_v15 = vmul.f32 -1.442695, %v474_v48 }
  0xb5   : > { %v420_v36 = vadd.f32 1.0, %v1497_v29  ;;  %v466_v59 = vpop.xlane.xlu0 %465  ;;  %v469_v23 = vpop.xlane.xlu1 %468 }
  0xb6   : > { %1510 = vrcp.f32 %v418_v41  ;;  %v475_v55 = vadd.f32 %v1930_v47, %v466_v59  ;;  %v476_v0 = vadd.f32 %v1930_v47, %v469_v23 }
  0xb7   : > { %v1499_v61 = vpop.eup %1498  ;;  %1512 = vrcp.f32 %v420_v36 }
  0xb8   : > { %v1501_v14 = vpop.eup %1500  ;;  %v419_v62 = vadd.f32 1.0, %v1499_v61  ;;  %v1383_v26 = vmul.f32 -1.442695, %v475_v55  ;;  %1514 = vpow2.f32 %v1381_v63  ;;  %v1384_v28 = vmul.f32 -1.442695, %v476_v0 }
  0xb9   : > { %v421_v52 = vadd.f32 1.0, %v1501_v14  ;;  %v526_v33 = vpop.xlane.xlu0 %525  ;;  %v529_v18 = vpop.xlane.xlu1 %528 }
  0xba   : > { %1516 = vrcp.f32 %v419_v62  ;;  %v548_v50 = vadd.f32 %v1930_v47, %v526_v33  ;;  %v549_v29 = vadd.f32 %v1930_v47, %v529_v18 }
  0xbb   : > { %v1503_v41 = vpop.eup %1502  ;;  %1518 = vrcp.f32 %v421_v52 }
  0xbc   : > { %v422_v59 = vadd.f32 1.0, %v1503_v41  ;;  %1520 = vpow2.f32 %v1383_v26  ;;  %v1386_v23 = vmul.f32 -1.442695, %v548_v50  ;;  %v1387_v36 = vmul.f32 -1.442695, %v549_v29 }
  0xbd   : > { %1522 = vpow2.f32 %v1382_v15  ;;  %v532_v61 = vpop.xlane.xlu0 %531  ;;  %v535_v55 = vpop.xlane.xlu1 %534 }
  0xbe   : > { %1524 = vpow2.f32 %v1384_v28  ;;  %v550_v63 = vadd.f32 %v1930_v47, %v532_v61  ;;  %v551_v29 = vadd.f32 %v1930_v47, %v535_v55 }
  0xbf   : > { %v1505_v48 = vpop.eup %1504  ;;  %1526 = vrcp.f32 %v422_v59 }
  0xc0   : > { %v424_v14 = vadd.f32 1.0, %v1505_v48  ;;  %1528 = vpow2.f32 %v1386_v23  ;;  %v1507_v0 = vpop.eup %1506  ;;  %v1388_v62 = vmul.f32 -1.442695, %v550_v63 }
  0xc1   : > { %1530 = vpow2.f32 %v1387_v36  ;;  %v538_v33 = vpop.xlane.xlu0 %537  ;;  %v541_v18 = vpop.xlane.xlu1 %540  ;;  %v423_v41 = vadd.f32 1.0, %v1507_v0 }
  0xc2   : > { %v1509_v52 = vpop.eup %1508  ;;  %v552_v26 = vadd.f32 %v1930_v47, %v538_v33  ;;  %v553_v15 = vadd.f32 %v1930_v47, %v541_v18  ;;  %1532 = vrcp.f32 %v424_v14  ;;  %v1389_v33 = vmul.f32 -1.442695, %v551_v29 }
  0xc3   : > { %v1511_v50 = vpop.eup %1510  ;;  %1534 = vpow2.f32 %v1388_v62  ;;  %v425_v48 = vadd.f32 1.0, %v1509_v52 }
  0xc4   : > { %v1513_v28 = vpop.eup %1512  ;;  %v1390_v61 = vmul.f32 -1.442695, %v552_v26  ;;  %658 = vperm.xlu1 %1488, %v1511_v50   ;;  %v1391_v59 = vmul.f32 -1.442695, %v553_v15 }
  0xc5   : > { %v544_v23 = vpop.xlane.xlu0 %543  ;;  %663 = vperm.xlu0 %1489, %v1513_v28   ;;  %v547_v36 = vpop.xlane.xlu1 %546 }
  0xc6   : > { %v1515_v63 = vpop.eup %1514  ;;  %1536 = vpow2.f32 %v1390_v61  ;;  %v554_v18 = vadd.f32 %v1930_v47, %v544_v23  ;;  %v555_v29 = vadd.f32 %v1930_v47, %v547_v36 }
  0xc7   : > { %v1517_v17 = vpop.eup %1516  ;;  %1538 = vpow2.f32 %v1391_v59  ;;  %v493_v14 = vadd.f32 1.0, %v1515_v63 }
  0xc8   : > { %v1519_v12 = vpop.eup %1518  ;;  %1540 = vrcp.f32 %v423_v41  ;;  %739 = vperm.xlu1 %1488, %v1517_v17   ;;  %v1392_v52 = vmul.f32 -1.442695, %v554_v18 }
  0xc9   : > { %v1521_v55 = vpop.eup %1520  ;;  %v614_v0 = vpop.xlane.xlu0 %613  ;;  %1542 = vrcp.f32 %v425_v48 }
  0xca   : > { %v617_v26 = vpop.xlane.xlu1 %616  ;;  %v1523_v15 = vpop.eup %1522  ;;  %v495_v62 = vadd.f32 1.0, %v1521_v55  ;;  %v624_v50 = vadd.f32 %v1930_v47, %v614_v0  ;;  %1544 = vpow2.f32 %v1389_v33  ;;  %v1393_v0 = vmul.f32 -1.442695, %v555_v29 }
  0xcb   : > { %v1525_v28 = vpop.eup %1524  ;;  %v625_v33 = vadd.f32 %v1930_v47, %v617_v26  ;;  %v494_v18 = vadd.f32 1.0, %v1523_v15 }
  0xcc   : > { %v1527_v61 = vpop.eup %1526  ;;  %1546 = vrcp.f32 %v495_v62  ;;  %v1394_v59 = vmul.f32 -1.442695, %v624_v50  ;;  %744 = vperm.xlu1 %1488, %v1519_v12   ;;  %v496_v12 = vadd.f32 1.0, %v1525_v28 }
  0xcd   : > { %v1529_v41 = vpop.eup %1528  ;;  %1548 = vrcp.f32 %v493_v14  ;;  %v620_v17 = vpop.xlane.xlu0 %619 }
  0xce   : > { %v1531_v23 = vpop.eup %1530  ;;  %v580_v63 = vadd.f32 1.0, %v1529_v41  ;;  %1550 = vpow2.f32 %v1394_v59  ;;  %v626_v48 = vadd.f32 %v1930_v47, %v620_v17  ;;  %v623_v55 = vpop.xlane.xlu1 %622 }
  0xcf   : > { %v581_v43 = vadd.f32 1.0, %v1531_v23  ;;  %1552 = vpow2.f32 %v1392_v52  ;;  %v1533_v62 = vpop.eup %1532  ;;  %v627_v50 = vadd.f32 %v1930_v47, %v623_v55  ;;  %v1395_v52 = vmul.f32 -1.442695, %v625_v33 }
  0xd0   : > { %1554 = vrcp.f32 %v580_v63  ;;  %v1396_v36 = vmul.f32 -1.442695, %v626_v48  ;;  %668 = vperm.xlu1 %1488, %v1527_v61   ;;  %v1535_v41 = vpop.eup %1534 }
  0xd1   : > { %1556 = vrcp.f32 %v581_v43  ;;  %v370_v14 = vpop.xlane.xlu0 %369  ;;  %v1397_v28 = vmul.f32 -1.442695, %v627_v50 }
  0xd2   : > { %1558 = vpow2.f32 %v1396_v36  ;;  %v386_v59 = vadd.f32 %v1930_v47, %v370_v14  ;;  %v373_v43 = vpop.xlane.xlu1 %372  ;;  %v582_v36 = vadd.f32 1.0, %v1535_v41 }
  0xd3   : > { %v1537_v17 = vpop.eup %1536  ;;  %1560 = vpow2.f32 %v1393_v0  ;;  %v387_v33 = vadd.f32 %v1930_v47, %v373_v43 }
  0xd4   : > { %v1539_v29 = vpop.eup %1538  ;;  %1562 = vrcp.f32 %v494_v18  ;;  %v584_v26 = vadd.f32 1.0, %v1537_v17  ;;  %v1379_v15 = vmul.f32 -1.442695, %v386_v59  ;;  %673 = vperm.xlu1 %1488, %v1533_v62  }
  0xd5   : > { %v1541_v23 = vpop.eup %1540  ;;  %1564 = vrcp.f32 %v496_v12  ;;  %v472_v61 = vpop.xlane.xlu0 %471  ;;  %v585_v63 = vadd.f32 1.0, %v1539_v29  ;;  %v1380_v41 = vmul.f32 -1.442695, %v387_v33 }
  0xd6   : > { %1566 = vrcp.f32 %v584_v26  ;;  %v477_v48 = vadd.f32 %v1930_v47, %v472_v61  ;;  %v1543_v55 = vpop.eup %1542 }
  0xd7   : > { %1568 = vpow2.f32 %v1395_v52  ;;  %v1545_v14 = vpop.eup %1544 }
  0xd8   : > { %1570 = vpow2.f32 %v1379_v15  ;;  %v1385_v0 = vmul.f32 -1.442695, %v477_v48  ;;  %749 = vperm.xlu1 %1488, %v1541_v23   ;;  %v583_v50 = vadd.f32 1.0, %v1545_v14 }
  0xd9   : > { %v1547_v18 = vpop.eup %1546  ;;  %1572 = vpow2.f32 %v1397_v28 }
  0xda   : > { %v1549_v62 = vpop.eup %1548  ;;  %1574 = vrcp.f32 %v585_v63  ;;  %700 = vperm.xlu0 %1489, %v1547_v18  }
  0xdb   : > { %v1551_v12 = vpop.eup %1550  ;;  %1576 = vrcp.f32 %v582_v36 }
  0xdc   : > { %v1553_v59 = vpop.eup %1552  ;;  %v640_v17 = vadd.f32 1.0, %v1551_v12  ;;  %1578 = vpow2.f32 %v1385_v0  ;;  %754 = vperm.xlu1 %1488, %v1543_v55  }
  0xdd   : > { %v1555_v52 = vpop.eup %1554  ;;  %v586_v15 = vadd.f32 1.0, %v1553_v59 }
  0xde   : > { %v1557_v29 = vpop.eup %1556  ;;  %1580 = vrcp.f32 %v640_v17  ;;  %805 = vperm.xlu0 %1489, %v1555_v52  }
  0xdf   : > { %v1559_v26 = vpop.eup %1558  ;;  %1582 = vrcp.f32 %v583_v50 }
  0xe0   : > { %v1561_v47 = vpop.eup %1560  ;;  %v642_v23 = vadd.f32 1.0, %v1559_v26  ;;  %690 = vperm.xlu1 %1488, %v1549_v62   ;;  %1584 = vpow2.f32 %v1380_v41 }
  0xe1   : > { %v1563_v61 = vpop.eup %1562  ;;  %v587_v63 = vadd.f32 1.0, %v1561_v47 }
  0xe2   : > { %v1565_v28 = vpop.eup %1564  ;;  %1586 = vrcp.f32 %v642_v23  ;;  %903 = vperm.xlu0 %1489, %v1557_v29  }
  0xe3   : > { %v1567_v43 = vpop.eup %1566  ;;  %1588 = vrcp.f32 %v586_v15 }
  0xe4   : > { %v1569_v48 = vpop.eup %1568  ;;  %695 = vperm.xlu1 %1488, %v1563_v61   ;;  %1590 = vrcp.f32 %v587_v63  ;;  %v1960_v63 = vld [vmem:[%s1720_s7] ss:$0 sm:$0xff] }
  0xe5   : > { %v1571_v55 = vpop.eup %1570  ;;  %v641_v33 = vadd.f32 1.0, %v1569_v48 }
  0xe6   : > { %v1573_v36 = vpop.eup %1572  ;;  %v426_v14 = vadd.f32 1.0, %v1571_v55  ;;  %815 = vperm.xlu0 %1489, %v1567_v43  }
  0xe7   : > { %v1575_v0 = vpop.eup %1574  ;;  %v643_v17 = vadd.f32 1.0, %v1573_v36 }
  0xe8   : > { %v1577_v18 = vpop.eup %1576  ;;  %1592 = vrcp.f32 %v426_v14  ;;  %705 = vperm.xlu1 %1488, %v1565_v28  }
  0xe9   : > { %v1579_v62 = vpop.eup %1578  ;;  %1594 = vrcp.f32 %v641_v33 }
  0xea   : > { %v497_v12 = vadd.f32 1.0, %v1579_v62  ;;  %913 = vperm.xlu0 %1489, %v1575_v0  }
  0xeb   : > { %v1581_v50 = vpop.eup %1580 }
  0xec   : > { %v1583_v59 = vpop.eup %1582  ;;  %1596 = vrcp.f32 %v497_v12  ;;  %810 = vperm.xlu1 %1488, %v1577_v18  }
  0xed   : > { %v1585_v41 = vpop.eup %1584  ;;  %1598 = vrcp.f32 %v643_v17 }
  0xee   : > { %854 = vperm.xlu0 %1489, %v1581_v50   ;;  %v427_v29 = vadd.f32 1.0, %v1585_v41 }
  0xef   : > { %v1587_v52 = vpop.eup %1586 }
  0xf0   : > { %908 = vperm.xlu1 %1488, %v1583_v59   ;;  %v1589_v26 = vpop.eup %1588  ;;  %1600 = vrcp.f32 %v427_v29 }
  0xf1   : > { %v1591_v47 = vpop.eup %1590 }
  0xf2   : > { %864 = vperm.xlu0 %1489, %v1587_v52  }
  0xf4   : > { %820 = vperm.xlu1 %1488, %v1589_v26  }
  0xf5   : > { %v1593_v15 = vpop.eup %1592 }
  0xf6   : > { %964 = vperm.xlu0 %1489, %v1593_v15   ;;  %v1595_v23 = vpop.eup %1594 }
  0xf8   : > { %918 = vperm.xlu1 %1488, %v1591_v47  }
  0xf9   : > { %v1597_v61 = vpop.eup %1596 }
  0xfa   : > { %989 = vperm.xlu0 %1489, %v1597_v61   ;;  %v1599_v28 = vpop.eup %1598 }
  0xfc   : > { %859 = vperm.xlu1 %1488, %v1595_v23  }
  0xfd   : > { %v1601_v43 = vpop.eup %1600 }
 0x100   : > { %869 = vperm.xlu1 %1488, %v1599_v28  }
 0x104   : > { %1014 = vperm.xlu1 %1488, %v1601_v43  }
 0x13f   : > { %v659_v48 = vpop.permute.xlu1 %658 }
 0x140   : > { %v676_v55 = vadd.f32 %v1960_v63, %v659_v48  ;;  %v664_v36 = vpop.permute.xlu0 %663 }
 0x141   : > { %v677_v14 = vadd.f32 %v1960_v63, %v664_v36 }
 0x142   : > { %v680_v0 = vmul.f32 %v676_v55, %v318_v4 }
 0x143   : > { %v740_v33 = vpop.permute.xlu1 %739  ;;  %v1968_v18 = vmul.f32 %v677_v14, %v320_v5 }
 0x144   : > { %684 = vst.msk [vmem:[#allocation2] sm:$0xff] %vm342_vm0, %v680_v0  ;;  %v757_v62 = vadd.f32 %v1960_v63, %v740_v33  ;;  %v774_v59 = vrot.slane %v680_v0, 1 }
 0x145   : > { %685 = vst.msk [vmem:[#allocation2 + $0x8] sm:$0xff] %vm342_vm0, %v1968_v18  ;;  %v777_v26 = vrot.slane %v1968_v18, 1 }
 0x146   : > { %v761_v12 = vmul.f32 %v757_v62, %v319_v6 }
 0x147   : > { %v745_v50 = vpop.permute.xlu1 %744 }
 0x148   : > { %v775_v17 = vrot.slane %v761_v12, 1  ;;  %v758_v4 = vadd.f32 %v1960_v63, %v745_v50 }
 0x14a   : > { %v762_v1 = vmul.f32 %v758_v4, %v321_v7  ;;  %v1980_v5 = vsel %vm773_vm2, %v774_v59, %v775_v17 }
 0x14b   : > { %v669_v41 = vpop.permute.xlu1 %668 }
 0x14c   : > { %v778_v52 = vrot.slane %v762_v1, 1  ;;  %v678_v29 = vadd.f32 %v1960_v63, %v669_v41 }
 0x14e   : > { %v1986_v2 = vmul.f32 %v678_v29, %v322_v10  ;;  %v1989_v6 = vsel %vm773_vm2, %v777_v26, %v778_v52 }
 0x14f   : > { %v674_v47 = vpop.permute.xlu1 %673 }
 0x150   : > { %686 = vst.msk [vmem:[#allocation2 + $0x10] sm:$0xff] %vm342_vm0, %v1986_v2  ;;  %v679_v3 = vadd.f32 %v1960_v63, %v674_v47  ;;  %v780_v9 = vrot.slane %v1986_v2, 1 }
 0x152   : > { %v1996_v7 = vmul.f32 %v679_v3, %v324_v19 }
 0x153   : > { %v1998_v15 = vpop.permute.xlu1 %749 }
 0x154   : > { %687 = vst.msk [vmem:[#allocation2 + $0x18] sm:$0xff] %vm342_vm0, %v1996_v7  ;;  %v783_v19 = vrot.slane %v1996_v7, 1 }
 0x155   : > { %v701_v10 = vpop.permute.xlu0 %700 }
 0x156   : > { %v710_v55 = vadd.f32 %v1960_v63, %v701_v10 }
 0x157   : > { %v755_v23 = vpop.permute.xlu1 %754 }
 0x158   : > { %v760_v61 = vadd.f32 %v1960_v63, %v755_v23  ;;  %v2015_v16 = vmul.f32 %v710_v55, %v450_v34 }
 0x159   : > { %v806_v28 = vpop.permute.xlu0 %805 }
 0x15a   : > { %v764_v43 = vmul.f32 %v760_v61, %v325_v20  ;;  %v823_v50 = vadd.f32 %v1960_v63, %v806_v28 }
 0x15b   : > { %v691_v48 = vpop.permute.xlu1 %690 }
 0x15c   : > { %v784_v36 = vrot.slane %v764_v43, 1  ;;  %v708_v8 = vadd.f32 %v1960_v63, %v691_v48  ;;  %v2025_v34 = vmul.f32 %v823_v50, %v508_v42 }
 0x15d   : > { %v904_v14 = vpop.permute.xlu0 %903 }
 0x15e   : > { %v712_v0 = vmul.f32 %v708_v8, %v448_v30  ;;  %v2011_v33 = vsel %vm773_vm2, %v783_v19, %v784_v36  ;;  %v921_v55 = vadd.f32 %v1960_v63, %v904_v14 }
 0x15f   : > { %v696_v62 = vpop.permute.xlu1 %695 }
 0x160   : > { %v709_v20 = vadd.f32 %v1960_v63, %v696_v62  ;;  %720 = vrot.lane.b32.xlu1 %v712_v0, %s1643_s13  ;;  %v2215_v0 = vunpack.c.l.bf16 %v1845_v58 }
 0x161   : > { %v816_v12 = vpop.permute.xlu0 %815 }
 0x162   : > { %v713_v59 = vmul.f32 %v709_v20, %v449_v31  ;;  %v825_v1 = vadd.f32 %v1960_v63, %v816_v12 }
 0x163   : > { %v706_v17 = vpop.permute.xlu1 %705 }
 0x164   : > { %v711_v30 = vadd.f32 %v1960_v63, %v706_v17  ;;  %722 = vrot.lane.b32.xlu0 %v713_v59, %s1643_s13  ;;  %724 = vrot.lane.b32.xlu1 %v2015_v16, %s1643_s13  ;;  %v2034_v29 = vmul.f32 %v825_v1, %v512_v60  ;;  %v1491_v1 = vld [vmem:[%s2204_s2 + $0x10] ss:$0 sps:$4 sm:$0x33]  }
 0x165   : > { %v914_v4 = vpop.permute.xlu0 %913  ;;  %1436 = vmatprep.subr.msk.bf16.mxu0 %vm1078_vm3, %v1491_v1 }
 0x166   : > { %v715_v41 = vmul.f32 %v711_v30, %v451_v38  ;;  %v923_v8 = vadd.f32 %v1960_v63, %v914_v4  ;;  %v939_v58 = vrot.slane %v2034_v29, 1  ;;  %v2218_v4 = vunpack.c.l.bf16 %v1858_v13 }
 0x167   : > { %v811_v52 = vpop.permute.xlu1 %810  ;;  %v1080_v13 = vsel %vm1078_vm3, %v1491_v1, 0 }
 0x168   : > { %v824_v25 = vadd.f32 %v1960_v63, %v811_v52  ;;  %726 = vrot.lane.b32.xlu0 %v715_v41, %s1643_s13  ;;  %835 = vrot.lane.b32.xlu1 %v2025_v34, %s1644_s14 }
 0x169   : > { %v855_v31 = vpop.permute.xlu0 %854  ;;  %1421 = vmatpush3.bf16.msra.mxu0 %v1080_v13 }
 0x16a   : > { %v2038_v42 = vmul.f32 %v824_v25, %v510_v51  ;;  %v872_v26 = vadd.f32 %v1960_v63, %v855_v31 }
 0x16b   : > { %v909_v32 = vpop.permute.xlu1 %908 }
 0x16c   : > { %837 = vrot.lane.b32.xlu0 %v2038_v42, %s1644_s14  ;;  %839 = vrot.lane.b32.xlu1 %v2034_v29, %s1644_s14  ;;  %v876_v47 = vmul.f32 %v872_v26, %v604_v27  ;;  %v1492_v29 = vld [vmem:[%s2204_s2 + $0x8] sm:$0xff]   ;;  %v2219_v26 = vunpack.c.l.bf16 %v1900_v54 }
 0x16d   : > { %v865_v38 = vpop.permute.xlu0 %864  ;;  %1422 = vmatprep.subr.bf16.mxu0 %v1492_v29 }
 0x16e   : > { %v874_v3 = vadd.f32 %v1960_v63, %v865_v38  ;;  %1423 = vmatpush3.bf16.msra.mxu0 %v1492_v29 }
 0x16f   : > { %v821_v10 = vpop.permute.xlu1 %820 }
 0x170   : > { %v826_v60 = vadd.f32 %v1960_v63, %v821_v10  ;;  %884 = vrot.lane.b32.xlu1 %v876_v47, %s1645_s15  ;;  %v878_v39 = vmul.f32 %v874_v3, %v606_v37  ;;  %v2220_v10 = vcombine.low %v1816_v44, %v1819_v45 }
 0x171   : > { %v965_v48 = vpop.permute.xlu0 %964 }
 0x172   : > { %v2051_v51 = vmul.f32 %v826_v60, %v514_v21  ;;  %v759_v21 = vadd.f32 %v1960_v63, %v1998_v15  ;;  %v2214_v15 = vunpack.c.l.bf16 %v1808_v40  ;;  %v927_v40 = vmul.f32 %v923_v8, %v2215_v0 }
 0x173   : > { %v919_v23 = vpop.permute.xlu1 %918 }
 0x174   : > { %841 = vrot.lane.b32.xlu0 %v2051_v51, %s1644_s14  ;;  %888 = vrot.lane.b32.xlu1 %v878_v39, %s1645_s15  ;;  %v925_v36 = vmul.f32 %v921_v55, %v2214_v15  ;;  %v940_v12 = vrot.slane %v927_v40, 1  ;;  %v924_v30 = vadd.f32 %v1960_v63, %v919_v23  ;;  %s1350_s14 = sshll.u32 %s2232_s19, 3 }
 0x175   : > { %v990_v19 = vpop.permute.xlu0 %989 }
 0x176   : > { %v934_v14 = vrot.slane %v925_v36, 1 }
 0x177   : > { %v860_v61 = vpop.permute.xlu1 %859 }
 0x178   : > { %v873_v27 = vadd.f32 %v1960_v63, %v860_v61  ;;  %970 = vrot.lane.b32.xlu1 %v1968_v18, %s1646_s16  ;;  %v967_v18 = vadd.f32 %v1960_v63, %v965_v48 }
 0x17a   : > { %v877_v28 = vmul.f32 %v873_v27, %v605_v35  ;;  %v763_v35 = vmul.f32 %v759_v21, %v323_v11  ;;  %v992_v11 = vadd.f32 %v1960_v63, %v990_v19 }
 0x17b   : > { %v870_v43 = vpop.permute.xlu1 %869 }
 0x17c   : > { %v875_v37 = vadd.f32 %v1960_v63, %v870_v43  ;;  %886 = vrot.lane.b32.xlu0 %v877_v28, %s1645_s15  ;;  %974 = vrot.lane.b32.xlu1 %v1996_v7, %s1646_s16  ;;  %v781_v7 = vrot.slane %v763_v35, 1 }
 0x17e   : > { %v879_v57 = vmul.f32 %v875_v37, %v607_v53  ;;  %v2071_v53 = vmul.f32 %v967_v18, %v326_v56  ;;  %v933_v56 = vrot.slane %v2025_v34, 1  ;;  %v782_v62 = vsel %vm773_vm2, %v780_v9, %v781_v7 }
 0x17f   : > { %v928_v34 = vmul.f32 %v924_v30, %v2218_v4 }
 0x180   : > { %890 = vrot.lane.b32.xlu0 %v879_v57, %s1645_s15  ;;  %995 = vrot.lane.b32.xlu1 %v713_v59, %s1647_s17  ;;  %v935_v50 = vsel %vm773_vm2, %v933_v56, %v934_v14  ;;  %v2217_v59 = vunpack.c.l.bf16 %v1827_v49  ;;  %v1015_v49 = vpop.permute.xlu1 %1014  ;;  %v1020_v54 = vrot.slane %v2071_v53, 1  ;;  %s280_s15 = sadd.s32 %s1350_s14, %s2236_s11 }
 0x181   : > { %v943_v52 = vrot.slane %v928_v34, 1  ;;  %v1017_v25 = vadd.f32 %v1960_v63, %v1015_v49 }
 0x184   : > { %972 = vrot.lane.b32.xlu0 %v1986_v2, %s1646_s16  ;;  %999 = vrot.lane.b32.xlu1 %v715_v41, %s1647_s17  ;;  %v922_v2 = vadd.f32 %v1960_v63, %v909_v32  ;;  %v936_v41 = vrot.slane %v2038_v42, 1  ;;  %v1493_v42 = vld [vmem:[%s2204_s2] sm:$0xff]   ;;  %v942_v63 = vrot.slane %v2051_v51, 1  ;;  %v1018_v32 = vmul.f32 %v1017_v25, %v2219_v26 }
 0x185   : > { %1424 = vmatprep.subr.bf16.mxu0 %v1493_v42 }
 0x186   : > { %v926_v17 = vmul.f32 %v922_v2, %v2217_v59  ;;  %v944_v38 = vsel %vm773_vm2, %v942_v63, %v943_v52  ;;  %1425 = vmatpush3.bf16.msra.mxu0 %v1493_v42  ;;  %v1021_v3 = vrot.slane %v1018_v32, 1  ;;  %v1409_v52 = vld [vmem:[%s2206_s4 + $0x1] ss:$0 sm:$0xff] }
 0x188   : > { %786 = vrot.lane.b32.xlu1 %v1980_v5, %s1648_s25  ;;  %976 = vrot.lane.b32.xlu0 %v2071_v53, %s1646_s16  ;;  %v2216_v5 = vunpack.c.h.bf16 %v1892_v46  ;;  %v937_v46 = vrot.slane %v926_v17, 1  ;;  %v1022_v60 = vsel %vm773_vm2, %v1020_v54, %v1021_v3  ;;  %v1399_v17 = vld [vmem:[%s2206_s4] ss:$0 sm:$0xff] }
 0x18a   : > { %v993_v20 = vmul.f32 %v992_v11, %v2216_v5  ;;  %v938_v31 = vsel %vm773_vm2, %v936_v41, %v937_v46 }
 0x18c   : > { %790 = vrot.lane.b32.xlu1 %v782_v62, %s1648_s25  ;;  %997 = vrot.lane.b32.xlu0 %v2015_v16, %s1647_s17  ;;  %v941_v16 = vsel %vm773_vm2, %v939_v58, %v940_v12 }
 0x190   : > { %945 = vrot.lane.b32.xlu1 %v935_v50, %s1649_s26  ;;  %1001 = vrot.lane.b32.xlu0 %v993_v20, %s1647_s17  ;;  %s1351_s17 = sshll.u32 %s280_s15, 3 }
 0x194   : > { %949 = vrot.lane.b32.xlu1 %v941_v16, %s1649_s26  ;;  %788 = vrot.lane.b32.xlu0 %v1989_v6, %s1648_s25 }
 0x198   : > { %1023 = vrot.lane.b32.xlu1 %v1989_v6, %s1650_s29  ;;  %792 = vrot.lane.b32.xlu0 %v2011_v33, %s1648_s25  ;;  %v1143_v6 = vld [vmem:[%s2205_s3] sm:$0x3] }
 0x199   : > { %1437 = vmatprep.subr.msk.bf16.mxu1 %vm1078_vm3, %v1143_v6  ;;  %v1161_v47 = vsel %vm1078_vm3, %v1143_v6, 0 }
 0x19a   : > { %1431 = vmatpush3.bf16.msra.mxu1 %v1161_v47 }
 0x19c   : > { %1027 = vrot.lane.b32.xlu1 %v2011_v33, %s1650_s29  ;;  %947 = vrot.lane.b32.xlu0 %v938_v31, %s1649_s26  ;;  %v1405_v33 = vcombine.low %v1870_v22, %v1874_v24 }
 0x19e   : > { %1432 = vmatprep.mubr.msk.bf16.mxu1 %vm342_vm0, %v1405_v33 }
 0x19f   : > { %1433 = vmatmul.mubr.msk.bf16.vlgmr.msra.gmra.mxu1 %vm342_vm0, %v2220_v10  ;;  %vm1237_vm0 = vcmask 64512  }
 0x1a0   : > { %951 = vrot.lane.b32.xlu0 %v944_v38, %s1649_s26  ;;  %s282_s26 = scalar_lea.vmem %s2207_s5, %s1351_s17 }
 0x1a4   : > { %1025 = vrot.lane.b32.xlu0 %v782_v62, %s1650_s29 }
 0x1a8   : > { %1029 = vrot.lane.b32.xlu0 %v1022_v60, %s1650_s29 }
 0x1d2   : > { %v721_v22 = vpop.permute.xlu1 %720 }
 0x1d3   : > { %733 = vst.msk [vmem:[#allocation2] sm:$0xff] %vm732_vm4, %v721_v22 }
 0x1d6   : > { %v725_v24 = vpop.permute.xlu1 %724  ;;  %v723_v39 = vpop.permute.xlu0 %722 }
 0x1d7   : > { %735 = vst.msk [vmem:[#allocation2 + $0x10] sm:$0xff] %vm732_vm4, %v725_v24  ;;  %734 = vst.msk [vmem:[#allocation2 + $0x8] sm:$0xff] %vm732_vm4, %v723_v39 }
 0x1da   : > { %v836_v51 = vpop.permute.xlu1 %835  ;;  %v727_v23 = vpop.permute.xlu0 %726 }
 0x1db   : > { %736 = vst.msk [vmem:[#allocation2 + $0x18] sm:$0xff] %vm732_vm4, %v727_v23 }
 0x1de   : > { %v840_v61 = vpop.permute.xlu1 %839  ;;  %v838_v28 = vpop.permute.xlu0 %837 }
 0x1e2   : > { %v885_v27 = vpop.permute.xlu1 %884 }
 0x1e6   : > { %v889_v44 = vpop.permute.xlu1 %888  ;;  %v842_v45 = vpop.permute.xlu0 %841 }
 0x1ea   : > { %v971_v43 = vpop.permute.xlu1 %970 }
 0x1ee   : > { %v975_v37 = vpop.permute.xlu1 %974  ;;  %v887_v57 = vpop.permute.xlu0 %886 }
 0x1f2   : > { %v996_v21 = vpop.permute.xlu1 %995  ;;  %v891_v48 = vpop.permute.xlu0 %890 }
 0x1f6   : > { %v1000_v18 = vpop.permute.xlu1 %999  ;;  %v973_v35 = vpop.permute.xlu0 %972 }
 0x1fa   : > { %v787_v55 = vpop.permute.xlu1 %786  ;;  %v977_v53 = vpop.permute.xlu0 %976 }
 0x1fb   : > { %799 = vst.msk [vmem:[#allocation2] sm:$0xff] %vm798_vm5, %v787_v55 }
 0x1fc   : > { %848 = vst.msk [vmem:[#allocation2] sm:$0xff] %vm847_vm6, %v836_v51 }
 0x1fd   : > { %897 = vst.msk [vmem:[#allocation2] sm:$0xff] %vm896_vm7, %v885_v27 }
 0x1fe   : > { %v791_v7 = vpop.permute.xlu1 %790  ;;  %v998_v15 = vpop.permute.xlu0 %997 }
 0x1ff   : > { %801 = vst.msk [vmem:[#allocation2 + $0x10] sm:$0xff] %vm798_vm5, %v791_v7 }
 0x200   : > { %850 = vst.msk [vmem:[#allocation2 + $0x10] sm:$0xff] %vm847_vm6, %v840_v61 }
 0x201   : > { %899 = vst.msk [vmem:[#allocation2 + $0x10] sm:$0xff] %vm896_vm7, %v889_v44 }
 0x202   : > { %v946_v36 = vpop.permute.xlu1 %945  ;;  %v1002_v8 = vpop.permute.xlu0 %1001 }
 0x203   : > { %958 = vst.msk [vmem:[#allocation2] sm:$0xff] %vm957_vm8, %v946_v36 }
 0x204   : > { %983 = vst.msk [vmem:[#allocation2] sm:$0xff] %vm982_vm9, %v971_v43 }
 0x205   : > { %1008 = vst.msk [vmem:[#allocation2] sm:$0xff] %vm1007_vm10, %v996_v21 }
 0x206   : > { %v950_v19 = vpop.permute.xlu1 %949  ;;  %v789_v9 = vpop.permute.xlu0 %788 }
 0x207   : > { %960 = vst.msk [vmem:[#allocation2 + $0x10] sm:$0xff] %vm957_vm8, %v950_v19 }
 0x208   : > { %800 = vst.msk [vmem:[#allocation2 + $0x8] sm:$0xff] %vm798_vm5, %v789_v9 }
 0x209   : > { %985 = vst.msk [vmem:[#allocation2 + $0x10] sm:$0xff] %vm982_vm9, %v975_v37 }
 0x20a   : > { %849 = vst.msk [vmem:[#allocation2 + $0x8] sm:$0xff] %vm847_vm6, %v838_v28  ;;  %v1024_v11 = vpop.permute.xlu1 %1023  ;;  %v793_v56 = vpop.permute.xlu0 %792 }
 0x20b   : > { %898 = vst.msk [vmem:[#allocation2 + $0x8] sm:$0xff] %vm896_vm7, %v887_v57 }
 0x20c   : > { %1010 = vst.msk [vmem:[#allocation2 + $0x10] sm:$0xff] %vm1007_vm10, %v1000_v18 }
 0x20d   : > { %1036 = vst.msk [vmem:[#allocation2] sm:$0xff] %vm1035_vm11, %v1024_v11 }
 0x20e   : > { %802 = vst.msk [vmem:[#allocation2 + $0x18] sm:$0xff] %vm798_vm5, %v793_v56  ;;  %v1028_v14 = vpop.permute.xlu1 %1027  ;;  %v948_v0 = vpop.permute.xlu0 %947 }
 0x20f   : > { %851 = vst.msk [vmem:[#allocation2 + $0x18] sm:$0xff] %vm847_vm6, %v842_v45 }
 0x210   : > { %900 = vst.msk [vmem:[#allocation2 + $0x18] sm:$0xff] %vm896_vm7, %v891_v48 }
 0x211   : > { %1038 = vst.msk [vmem:[#allocation2 + $0x10] sm:$0xff] %vm1035_vm11, %v1028_v14 }
 0x212   : > { %959 = vst.msk [vmem:[#allocation2 + $0x8] sm:$0xff] %vm957_vm8, %v948_v0  ;;  %v952_v40 = vpop.permute.xlu0 %951 }
 0x213   : > { %984 = vst.msk [vmem:[#allocation2 + $0x8] sm:$0xff] %vm982_vm9, %v973_v35 }
 0x214   : > { %1009 = vst.msk [vmem:[#allocation2 + $0x8] sm:$0xff] %vm1007_vm10, %v998_v15  ;;  %v1040_v20 = vld [vmem:[#allocation2] sm:$0xff] }
 0x215   : > { %961 = vst.msk [vmem:[#allocation2 + $0x18] sm:$0xff] %vm957_vm8, %v952_v40 }
 0x216   : > { %986 = vst.msk [vmem:[#allocation2 + $0x18] sm:$0xff] %vm982_vm9, %v977_v53  ;;  %v1026_v62 = vpop.permute.xlu0 %1025 }
 0x217   : > { %1011 = vst.msk [vmem:[#allocation2 + $0x18] sm:$0xff] %vm1007_vm10, %v1002_v8 }
 0x218   : > { %1037 = vst.msk [vmem:[#allocation2 + $0x8] sm:$0xff] %vm1035_vm11, %v1026_v62  ;;  %v1042_v50 = vld [vmem:[#allocation2 + $0x10] sm:$0xff] }
 0x21a   : > { %v1030_v5 = vpop.permute.xlu0 %1029 }
 0x21b   : > { %1039 = vst.msk [vmem:[#allocation2 + $0x18] sm:$0xff] %vm1035_vm11, %v1030_v5 }
 0x21f   : > { %v1041_v12 = vld [vmem:[#allocation2 + $0x8] sm:$0xff] }
 0x220   : > { %v1044_v2 = vpack.c.bf16 %v1041_v12, %v1040_v20 }
 0x222   : > { %1426 = vmatprep.mubr.msk.bf16.mxu0 %vm1071_vm12, %v1044_v2  ;;  %v1043_v58 = vld [vmem:[#allocation2 + $0x18] sm:$0xff] }
 0x223   : > { %v1045_v59 = vpack.c.bf16 %v1043_v58, %v1042_v50 }
 0x225   : > { %1427 = vmatmul.mubr.msk.bf16.vlgmr.msra.gmra.mxu0 %vm1071_vm12, %v1045_v59 }
 0x25f   : > { %v1434_v30 = vpop.f32.mrf.mxu1 }
 0x261   : > { %v1197_v49 = vpop.f32.mrf.mxu1 }
 0x263   : > { %v1435_v47 = vpop.f32.mrf.mxu1 }
 0x265   : > { %v1200_v23 = vpop.f32.mrf.mxu1 }
 0x2e5   : > { %v1428_v16 = vpop.f32.mrf.mxu0 }
 0x2e6   : > { %v1125_v46 = vadd.f32 %v1428_v16, %v1399_v17 }
 0x2e7   : > { %v1116_v4 = vpop.f32.mrf.mxu0 }
 0x2e8   : > { %vm1133_vm13 = vcmp.gt.f32.partialorder %v1125_v46, 0.0  ;;  %v1137_v34 = vmul.f32 0.01, %v1125_v46  ;;  %v1117_v1 = vadd.f32 %v1399_v17, %v1116_v4 }
 0x2e9   : > { %v1429_v41 = vpop.f32.mrf.mxu0 }
 0x2ea   : > { %v1141_v13 = vsel %vm1133_vm13, %v1125_v46, %v1137_v34  ;;  %vm1131_vm14 = vcmp.gt.f32.partialorder %v1117_v1, 0.0  ;;  %v1135_v25 = vmul.f32 0.01, %v1117_v1  ;;  %v1128_v31 = vadd.f32 %v1429_v41, %v1399_v17 }
 0x2eb   : > { %v1214_v29 = vadd.f32 %v1434_v30, %v1141_v13  ;;  %v1119_v6 = vpop.f32.mrf.mxu0 }
 0x2ec   : > { %v1139_v42 = vsel %vm1131_vm14, %v1117_v1, %v1135_v25  ;;  %vm1134_vm15 = vcmp.gt.f32.partialorder %v1128_v31, 0.0  ;;  %v1138_v63 = vmul.f32 0.01, %v1128_v31  ;;  %v1120_v26 = vadd.f32 %v1399_v17, %v1119_v6 }
 0x2ed   : > { %v1223_v32 = vadd.f32 %v1409_v52, %v1214_v29  ;;  %v1212_v38 = vadd.f32 %v1197_v49, %v1139_v42 }
 0x2ee   : > { %v1142_v33 = vsel %vm1134_vm15, %v1128_v31, %v1138_v63  ;;  %vm1132_vm1 = vcmp.gt.f32.partialorder %v1120_v26, 0.0  ;;  %v1136_v3 = vmul.f32 0.01, %v1120_v26 }
 0x2ef   : > { %vm1227_vm2 = vcmp.gt.f32.partialorder %v1223_v32, 0.0  ;;  %v1231_v54 = vmul.f32 0.01, %v1223_v32  ;;  %v1221_v10 = vadd.f32 %v1409_v52, %v1212_v38  ;;  %v1215_v60 = vadd.f32 %v1435_v47, %v1142_v33 }
 0x2f0   : > { %v1140_v22 = vsel %vm1132_vm1, %v1120_v26, %v1136_v3 }
 0x2f1   : > { %v1235_v24 = vsel %vm1227_vm2, %v1223_v32, %v1231_v54  ;;  %vm1225_vm3 = vcmp.gt.f32.partialorder %v1221_v10, 0.0  ;;  %v1229_v39 = vmul.f32 0.01, %v1221_v10  ;;  %v1224_v51 = vadd.f32 %v1409_v52, %v1215_v60 }
 0x2f2   : > { %1240 = vst.msk [vmem:[%s282_s26 + $0x10] sm:$0xff] %vm1237_vm0, %v1235_v24  ;;  %v1213_v61 = vadd.f32 %v1200_v23, %v1140_v22 }
 0x2f3   : > { %v1233_v27 = vsel %vm1225_vm3, %v1221_v10, %v1229_v39  ;;  %vm1228_vm4 = vcmp.gt.f32.partialorder %v1224_v51, 0.0  ;;  %v1232_v28 = vmul.f32 0.01, %v1224_v51 }
 0x2f4   : > { %1238 = vst.msk [vmem:[%s282_s26] sm:$0xff] %vm1237_vm0, %v1233_v27  ;;  %v1222_v44 = vadd.f32 %v1409_v52, %v1213_v61 }
 0x2f5   : > { %v1236_v45 = vsel %vm1228_vm4, %v1224_v51, %v1232_v28 }
 0x2f6   : > { %1241 = vst.msk [vmem:[%s282_s26 + $0x18] sm:$0xff] %vm1237_vm0, %v1236_v45  ;;  %vm1226_vm5 = vcmp.gt.f32.partialorder %v1222_v44, 0.0  ;;  %v1230_v43 = vmul.f32 0.01, %v1222_v44 }
 0x2f8   : > { %v1234_v37 = vsel %vm1226_vm5, %v1222_v44, %v1230_v43 }
 0x2f9   : > { %1239 = vst.msk [vmem:[%s282_s26 + $0x8] sm:$0xff] %vm1237_vm0, %v1234_v37 }
 0x2fa PF: > { %s15_s22 = sadd.s32 1, %s1640_s22   ;;  %s2221_s18 = smov %s1632_s20 }
 0x2fb   : > { %p12_p8 = scmp.ge.s32.totalorder %s15_s22, 6   ;;  %s2222_s19 = smov %s1636_s21 }
 0x2fc   : > { %s2223_s20 = smov %s2226_s23  ;;  %s2224_s21 = smov %s2230_s24 }
 0x2fd   :  { %14 = sbr.rel (!%p12_p8) target bundleno = 3 (0x3), region = 76 }

</bundles_post_ra>
